<compile_context>
chip_gen: v7x
topology: tpu7x:2x2x1
jax: 0.10.0
libtpu: 0.0.40
codegen_flags: <defaults>
</compile_context>

<pallas_src>
import numpy as np
import jax
import jax.numpy as jnp
from jax.experimental import pallas as pl
from jax.experimental.pallas import tpu as pltpu

CHUNK = 4            # chunk_size of the module
H_IN = 3 * CHUNK     # 12
W_IN = CHUNK         # 4
N_IN = 3 * H_IN * W_IN          # 144 flattened input features  (ci, y, x)
N_C1 = 3 * 8 * 4 * W_IN         # 384 conv1 features, ordered (r, co, g, x)
N_P1 = 8 * 4 * W_IN             # 128 pooled conv1 features, ordered (ci, y, x)
N_C2 = 4 * W_IN * 16            # 256 conv2 features, ordered (s = y*4+x, co)
N_OUT = 3 * CHUNK * CHUNK       # 48  output features, ordered (co, ky, kx)


def _round_up(v, m):
    return ((v + m - 1) // m) * m


# --------------------------------------------------------------------------
# Kernel: one batch tile (TB rows) per grid step; batch on sublanes,
# features on lanes.  All matmuls are plain NN-form jnp.dot on the MXU.
# --------------------------------------------------------------------------
def _outpainter_kernel(x_ref, a1_ref, b1_ref, a2_ref, b2_ref,
                       wl_ref, bl_ref, wt_ref, bt_ref, out_ref):
    """Shapes (TB = batch tile):
      x_ref  : (TB, 144)   flattened NCHW inputs, cols in (ci, y, x) order
      a1_ref : (144, 384)  conv1 folded to a dense map, cols (r, co, g, x)
      b1_ref : (1, 384)
      a2_ref : (128, 256)  conv2 folded to a dense map, cols (s, co)
      b2_ref : (1, 256)
      wl_ref : (16, 16)    linear weight, (in, out)
      bl_ref : (1, 16)
      wt_ref : (16, 48)    conv-transpose weight, (cin, cout*4*4)
      bt_ref : (1, 48)
      out_ref: (TB, 48)    sigmoid output, cols in (co, ky, kx) order
    """
    f32 = jnp.float32
    cdt = a1_ref.dtype          # conv matmul operand dtype (f32 or bf16)

    x = x_ref[...].astype(cdt)                                   # (TB, 144)

    # ---- Conv2d(3->8, k3, p1) + ReLU : one MXU matmul ---------------------
    h1 = jnp.dot(x, a1_ref[...], preferred_element_type=f32) + b1_ref[...]
    h1 = jnp.maximum(h1, 0.0)                                    # (TB, 384)

    # ---- MaxPool2d((3,1)) : max of three vreg-aligned 128-lane slabs ------
    p1 = jnp.maximum(jnp.maximum(h1[:, 0:128], h1[:, 128:256]), h1[:, 256:384])

    # ---- Conv2d(8->16, k3, p1) + ReLU : one MXU matmul --------------------
    h2 = jnp.dot(p1.astype(cdt), a2_ref[...],
                 preferred_element_type=f32) + b2_ref[...]
    h2 = jnp.maximum(h2, 0.0)                                    # (TB, 256)

    # ---- MaxPool2d(4) : reduce over s (lane stride 16), channels survive --
    # Columns are ordered (s, co); first halve with a vreg-aligned slice,
    # then tree-reduce within one 128-lane vreg via cheap XLU lane rolls.
    m = jnp.maximum(h2[:, 0:128], h2[:, 128:256])                # (TB, 128)
    for sh in (64, 32, 16):
        m = jnp.maximum(m, pltpu.roll(m, sh, axis=1))
    p2 = m[:, 0:16]                                              # (TB, 16)

    # ---- Linear(16,16) + ReLU ---------------------------------------------
    h3 = jnp.maximum(
        jnp.dot(p2, wl_ref[...], preferred_element_type=f32) + bl_ref[...],
        0.0)                                                     # (TB, 16)

    # ---- ConvTranspose2d(16->3, k4) on 1x1 input (== matmul) + Sigmoid ----
    o = jax.nn.sigmoid(
        jnp.dot(h3, wt_ref[...], preferred_element_type=f32) + bt_ref[...])
    out_ref[...] = o.astype(out_ref.dtype)                       # (TB, 48)


# --------------------------------------------------------------------------
# Host-side (one-time) weight preprocessing.
# --------------------------------------------------------------------------
def _conv3x3_dense(W, H, Wd):
    """Dense matrix of a 3x3 SAME (zero-pad) conv, built from weights only.

    W: (3, 3, C_in, C_out) in (dy, dx, cin, cout) order.
    Returns A of shape (C_out, H, Wd, C_in*H*Wd) with
      out[co, y, x] = sum_k A[co, y, x, k] * in_flat[k],
    in_flat in (ci, y, x) C-order.
    """
    C_in, C_out = W.shape[2], W.shape[3]
    n_in = C_in * H * Wd
    basis = jnp.eye(n_in, dtype=jnp.float32).reshape(n_in, C_in, H, Wd)
    xp = jnp.pad(basis, ((0, 0), (0, 0), (1, 1), (1, 1)))
    acc = jnp.zeros((n_in, C_out, H, Wd), jnp.float32)
    hp = jax.lax.Precision.HIGHEST
    for dy in range(3):
        for dx in range(3):
            acc = acc + jnp.einsum('ncij,co->noij',
                                   xp[:, :, dy:dy + H, dx:dx + Wd],
                                   W[dy, dx], precision=hp)
    return jnp.transpose(acc, (1, 2, 3, 0))          # (C_out, H, Wd, n_in)


def prepare_params(params, conv_dtype=jnp.float32):
    """Fold module weights into kernel-ready dense maps (done once).

    conv_dtype=jnp.bfloat16 enables the bf16-MXU-operand option (v6e/v7x);
    biases and the tiny linear / conv-transpose weights stay f32.
    """
    W1, b1, W2, b2, Wl, bl, Wt2d, bt48 = params

    # conv1: columns ordered (r, co, g, x) with y = 3*g + r, so MaxPool((3,1))
    # is max(h1[:,0:128], h1[:,128:256], h1[:,256:384]); pooled columns come
    # out in (co, g, x) = conv2's (ci, y, x) order.
    A1f = _conv3x3_dense(W1, H_IN, W_IN)             # (8, 12, 4, 144)
    A1 = jnp.transpose(A1f.reshape(8, 4, 3, W_IN, N_IN),
                       (2, 0, 1, 3, 4)).reshape(N_C1, N_IN)
    A1T = A1.T.astype(conv_dtype)                    # (144, 384)
    b1r = jnp.broadcast_to(b1.reshape(1, 8, 1, 1),
                           (3, 8, 4, W_IN)).reshape(1, N_C1).astype(jnp.float32)

    # conv2: columns ordered (s = y*4 + x, co), so MaxPool2d(4) is a stride-16
    # lane reduction and yields features in channel order.
    A2f = _conv3x3_dense(W2, 4, W_IN)                # (16, 4, 4, 128)
    A2 = jnp.transpose(A2f, (1, 2, 0, 3)).reshape(N_C2, N_P1)
    A2T = A2.T.astype(conv_dtype)                    # (128, 256)
    b2r = jnp.broadcast_to(b2.reshape(1, 1, 16),
                           (4, W_IN, 16)).reshape(1, N_C2).astype(jnp.float32)

    return (A1T, b1r, A2T, b2r,
            Wl.astype(jnp.float32),                   # (in, out) = (16, 16)
            bl.reshape(1, 16).astype(jnp.float32),
            Wt2d.astype(jnp.float32),                 # (16, 48)
            bt48.reshape(1, N_OUT).astype(jnp.float32))


# --------------------------------------------------------------------------
# Wrapper.
# --------------------------------------------------------------------------
def outpainter_forward(x_nchw, prepared, batch_tile=1024):
    """x_nchw: (B, 3, 12, 4) float32 (PyTorch NCHW). Returns (B, 3, 4, 4)."""
    A1T, b1r, A2T, b2r, Wl, blr, Wt, btr = prepared
    B = x_nchw.shape[0]

    # ---- batch tile selection (all multiples of 128) ----------------------
    TB = min(batch_tile, _round_up(max(B, 1), 128))
    # v7x megacore: make sure the ("parallel",) grid has >= 2 blocks for
    # non-trivial batches so both TensorCores get work.
    if B > 256 and pl.cdiv(B, TB) < 2:
        TB = min(TB, _round_up(pl.cdiv(B, 2), 128))
    n_blocks = pl.cdiv(B, TB)
    B_pad = n_blocks * TB

    # NCHW -> (B, 144) is a free view in (ci, y, x) C-order; no transpose.
    x = x_nchw.reshape(B, N_IN)
    if B_pad != B:
        x = jnp.pad(x, ((0, B_pad - B), (0, 0)))

    out = pl.pallas_call(
        _outpainter_kernel,
        out_shape=jax.ShapeDtypeStruct((B_pad, N_OUT), jnp.float32),
        grid=(n_blocks,),
        in_specs=[
            pl.BlockSpec((TB, N_IN), lambda i: (i, 0)),      # x
            pl.BlockSpec((N_IN, N_C1), lambda i: (0, 0)),    # A1^T
            pl.BlockSpec((1, N_C1), lambda i: (0, 0)),       # b1
            pl.BlockSpec((N_P1, N_C2), lambda i: (0, 0)),    # A2^T
            pl.BlockSpec((1, N_C2), lambda i: (0, 0)),       # b2
            pl.BlockSpec((16, 16), lambda i: (0, 0)),        # Wl (in,out)
            pl.BlockSpec((1, 16), lambda i: (0, 0)),         # bl
            pl.BlockSpec((16, N_OUT), lambda i: (0, 0)),     # Wt (in,out)
            pl.BlockSpec((1, N_OUT), lambda i: (0, 0)),      # bt
        ],
        out_specs=pl.BlockSpec((TB, N_OUT), lambda i: (i, 0)),
        compiler_params=pltpu.CompilerParams(
            dimension_semantics=("parallel",),
            vmem_limit_bytes=32 * 1024 * 1024),
    )(x, A1T, b1r, A2T, b2r, Wl, blr, Wt, btr)

    # Output is already batch-major: reshape is free.
    return out[:B].reshape(B, 3, CHUNK, CHUNK)


# --------------------------------------------------------------------------
# Parameters & pure-JAX reference (for the correctness check).
# --------------------------------------------------------------------------
def init_params(key):
    """Deterministic synthetic parameters with the module's shapes."""
    k = jax.random.split(key, 8)
    W1 = jax.random.normal(k[0], (3, 3, 3, 8), jnp.float32) / np.sqrt(3 * 9)
    b1 = jax.random.normal(k[1], (1, 8), jnp.float32) * 0.05
    W2 = jax.random.normal(k[2], (3, 3, 8, 16), jnp.float32) / np.sqrt(8 * 9)
    b2 = jax.random.normal(k[3], (1, 16), jnp.float32) * 0.05
    Wl = jax.random.normal(k[4], (16, 16), jnp.float32) / np.sqrt(16)  # (in,out)
    bl = jax.random.normal(k[5], (1, 16), jnp.float32) * 0.05
    Wt = jax.random.normal(k[6], (16, 3, CHUNK, CHUNK), jnp.float32) / np.sqrt(16)
    bt = jax.random.normal(k[7], (3,), jnp.float32) * 0.05
    Wt2d = Wt.reshape(16, 3 * CHUNK * CHUNK)         # (cin, cout*4*4)
    bt48 = jnp.repeat(bt, CHUNK * CHUNK).reshape(1, 3 * CHUNK * CHUNK)
    return (W1, b1, W2, b2, Wl, bl, Wt2d, bt48)


def reference_forward(x_nchw, params):
    """Pure-JAX reference with identical semantics (uses the raw weights)."""
    W1, b1, W2, b2, Wl, bl, Wt2d, bt48 = params
    B = x_nchw.shape[0]
    hp = jax.lax.Precision.HIGHEST
    x = jnp.transpose(x_nchw, (0, 2, 3, 1))          # NHWC

    def conv3x3(x, W, b):
        Hh, Ww = x.shape[1], x.shape[2]
        xp = jnp.pad(x, ((0, 0), (1, 1), (1, 1), (0, 0)))
        acc = jnp.zeros(x.shape[:3] + (W.shape[-1],), jnp.float32)
        for dy in range(3):
            for dx in range(3):
                acc = acc + jnp.einsum('bijc,co->bijo',
                                       xp[:, dy:dy + Hh, dx:dx + Ww],
                                       W[dy, dx], precision=hp)
        return acc + b.reshape(1, 1, 1, -1)

    h = jax.nn.relu(conv3x3(x, W1, b1))
    h = jnp.max(h.reshape(B, 4, 3, W_IN, 8), axis=2)       # MaxPool2d((3,1))
    h = jax.nn.relu(conv3x3(h, W2, b2))
    h = jnp.max(h, axis=(1, 2))                             # MaxPool2d(4)
    h = jax.nn.relu(jnp.dot(h, Wl, precision=hp) + bl)
    o = jax.nn.sigmoid(jnp.dot(h, Wt2d, precision=hp) + bt48)
    return o.reshape(B, 3, CHUNK, CHUNK)


# TODO(synk): image_forward / outpaint_right / image_outpaint / perform_outpaint
# are host-side tiling / rot90 / autoregressive drivers around forward(); they
# should batch all chunks of an image into one forward() call (and stay in the
# (B, features) layout this kernel consumes) but are not kernelized here.

if __name__ == "__main__":
    key = jax.random.PRNGKey(0)
    kx, kp, kx2 = jax.random.split(key, 3)
    params = init_params(kp)

    # f32 folded weights: exact-parity path.
    prepared_f32 = prepare_params(params, conv_dtype=jnp.float32)

    # Small batch (matches module-level usage).
    B = 2
    x = jax.random.uniform(kx, (B, 3, H_IN, W_IN), jnp.float32)   # NCHW
    out = jax.block_until_ready(outpainter_forward(x, prepared_f32))
    ref = reference_forward(x, params)
    assert out.shape == (B, 3, CHUNK, CHUNK), out.shape
    max_err = float(jnp.max(jnp.abs(out - ref)))
    assert max_err < 1e-3, f"max abs error {max_err}"

    # Larger, non-multiple-of-tile batch: exercises grid > 1 (megacore split)
    # and the batch-padding path.
    xb = jax.random.uniform(kx2, (300, 3, H_IN, W_IN), jnp.float32)
    outb = jax.block_until_ready(outpainter_forward(xb, prepared_f32))
    refb = reference_forward(xb, params)
    max_err_b = float(jnp.max(jnp.abs(outb - refb)))
    assert max_err_b < 1e-3, f"max abs error (B=300) {max_err_b}"

    # bf16 MXU-operand option (perf path for v6e/v7x); documented looser
    # tolerance per the review's correctness note.
    prepared_bf16 = prepare_params(params, conv_dtype=jnp.bfloat16)
    outc = jax.block_until_ready(outpainter_forward(xb, prepared_bf16))
    max_err_c = float(jnp.max(jnp.abs(outc - refb)))
    assert max_err_c < 2e-2, f"max abs error (bf16) {max_err_c}"

    print("KERNEL_OK")
</pallas_src>

<mosaic_0001>
module attributes {stable_mosaic.version = 11 : i64} {
  func.func @_outpainter_kernel(%arg0: i32, %arg1: memref<128x144xf32, #tpu.memory_space<vmem>>, %arg2: memref<144x384xf32, #tpu.memory_space<vmem>>, %arg3: memref<1x384xf32, #tpu.memory_space<vmem>>, %arg4: memref<128x256xf32, #tpu.memory_space<vmem>>, %arg5: memref<1x256xf32, #tpu.memory_space<vmem>>, %arg6: memref<16x16xf32, #tpu.memory_space<vmem>>, %arg7: memref<1x16xf32, #tpu.memory_space<vmem>>, %arg8: memref<16x48xf32, #tpu.memory_space<vmem>>, %arg9: memref<1x48xf32, #tpu.memory_space<vmem>>, %arg10: memref<128x48xf32, #tpu.memory_space<vmem>>) attributes {dimension_semantics = [#tpu.dimension_semantics<parallel>], iteration_bounds = array<i64: 1>, scalar_prefetch = 0 : i64, scratch_operands = 0 : i64, tpu.core_type = #tpu.core_type<tc>, window_params = [{transform_indices = @transform_0, window_bounds = array<i64: 128, 144>}, {pipeline_mode = #tpu.pipeline_mode<synchronous>, transform_indices = @transform_1, window_bounds = array<i64: 144, 384>}, {pipeline_mode = #tpu.pipeline_mode<synchronous>, transform_indices = @transform_2, window_bounds = array<i64: 1, 384>}, {pipeline_mode = #tpu.pipeline_mode<synchronous>, transform_indices = @transform_3, window_bounds = array<i64: 128, 256>}, {pipeline_mode = #tpu.pipeline_mode<synchronous>, transform_indices = @transform_4, window_bounds = array<i64: 1, 256>}, {pipeline_mode = #tpu.pipeline_mode<synchronous>, transform_indices = @transform_5, window_bounds = array<i64: 16, 16>}, {pipeline_mode = #tpu.pipeline_mode<synchronous>, transform_indices = @transform_6, window_bounds = array<i64: 1, 16>}, {pipeline_mode = #tpu.pipeline_mode<synchronous>, transform_indices = @transform_7, window_bounds = array<i64: 16, 48>}, {pipeline_mode = #tpu.pipeline_mode<synchronous>, transform_indices = @transform_8, window_bounds = array<i64: 1, 48>}, {transform_indices = @transform_9, window_bounds = array<i64: 128, 48>}]} {
    %c0 = arith.constant 0 : index
    %c0_0 = arith.constant 0 : index
    %0 = vector.load %arg1[%c0, %c0_0] : memref<128x144xf32, #tpu.memory_space<vmem>>, vector<128x144xf32>
    %c0_1 = arith.constant 0 : index
    %c0_2 = arith.constant 0 : index
    %1 = vector.load %arg2[%c0_1, %c0_2] : memref<144x384xf32, #tpu.memory_space<vmem>>, vector<144x384xf32>
    %cst = arith.constant dense<0.000000e+00> : vector<128x384xf32>
    %2 = tpu.matmul %0, %1, %cst {dimension_numbers = #tpu.dot_dimension_numbers<[1], [0], [0], [1], [0, 0, 1, 1], [], []>} : vector<128x144xf32>, vector<144x384xf32>, vector<128x384xf32> -> vector<128x384xf32>
    %c0_3 = arith.constant 0 : index
    %c0_4 = arith.constant 0 : index
    %3 = vector.load %arg3[%c0_3, %c0_4] : memref<1x384xf32, #tpu.memory_space<vmem>>, vector<1x384xf32>
    %4 = vector.broadcast %3 : vector<1x384xf32> to vector<128x384xf32>
    %5 = arith.addf %2, %4 : vector<128x384xf32>
    %cst_5 = arith.constant 0.000000e+00 : f32
    %6 = vector.broadcast %cst_5 : f32 to vector<128x384xf32>
    %7 = arith.maximumf %5, %6 : vector<128x384xf32>
    %8 = vector.extract_strided_slice %7 {offsets = [0, 0], sizes = [128, 128], strides = [1, 1]} : vector<128x384xf32> to vector<128x128xf32>
    %9 = vector.extract_strided_slice %7 {offsets = [0, 128], sizes = [128, 128], strides = [1, 1]} : vector<128x384xf32> to vector<128x128xf32>
    %10 = arith.maximumf %8, %9 : vector<128x128xf32>
    %11 = vector.extract_strided_slice %7 {offsets = [0, 256], sizes = [128, 128], strides = [1, 1]} : vector<128x384xf32> to vector<128x128xf32>
    %12 = arith.maximumf %10, %11 : vector<128x128xf32>
    %c0_6 = arith.constant 0 : index
    %c0_7 = arith.constant 0 : index
    %13 = vector.load %arg4[%c0_6, %c0_7] : memref<128x256xf32, #tpu.memory_space<vmem>>, vector<128x256xf32>
    %cst_8 = arith.constant dense<0.000000e+00> : vector<128x256xf32>
    %14 = tpu.matmul %12, %13, %cst_8 {dimension_numbers = #tpu.dot_dimension_numbers<[1], [0], [0], [1], [0, 0, 1, 1], [], []>} : vector<128x128xf32>, vector<128x256xf32>, vector<128x256xf32> -> vector<128x256xf32>
    %c0_9 = arith.constant 0 : index
    %c0_10 = arith.constant 0 : index
    %15 = vector.load %arg5[%c0_9, %c0_10] : memref<1x256xf32, #tpu.memory_space<vmem>>, vector<1x256xf32>
    %16 = vector.broadcast %15 : vector<1x256xf32> to vector<128x256xf32>
    %17 = arith.addf %14, %16 : vector<128x256xf32>
    %cst_11 = arith.constant 0.000000e+00 : f32
    %18 = vector.broadcast %cst_11 : f32 to vector<128x256xf32>
    %19 = arith.maximumf %17, %18 : vector<128x256xf32>
    %20 = vector.extract_strided_slice %19 {offsets = [0, 0], sizes = [128, 128], strides = [1, 1]} : vector<128x256xf32> to vector<128x128xf32>
    %21 = vector.extract_strided_slice %19 {offsets = [0, 128], sizes = [128, 128], strides = [1, 1]} : vector<128x256xf32> to vector<128x128xf32>
    %22 = arith.maximumf %20, %21 : vector<128x128xf32>
    %c64_i32 = arith.constant 64 : i32
    %23 = tpu.dynamic_rotate %22 by %c64_i32 dim 1 : vector<128x128xf32>, i32 -> vector<128x128xf32>
    %24 = arith.maximumf %22, %23 : vector<128x128xf32>
    %c32_i32 = arith.constant 32 : i32
    %25 = tpu.dynamic_rotate %24 by %c32_i32 dim 1 : vector<128x128xf32>, i32 -> vector<128x128xf32>
    %26 = arith.maximumf %24, %25 : vector<128x128xf32>
    %c16_i32 = arith.constant 16 : i32
    %27 = tpu.dynamic_rotate %26 by %c16_i32 dim 1 : vector<128x128xf32>, i32 -> vector<128x128xf32>
    %28 = arith.maximumf %26, %27 : vector<128x128xf32>
    %29 = vector.extract_strided_slice %28 {offsets = [0, 0], sizes = [128, 16], strides = [1, 1]} : vector<128x128xf32> to vector<128x16xf32>
    %c0_12 = arith.constant 0 : index
    %c0_13 = arith.constant 0 : index
    %30 = vector.load %arg6[%c0_12, %c0_13] : memref<16x16xf32, #tpu.memory_space<vmem>>, vector<16x16xf32>
    %cst_14 = arith.constant dense<0.000000e+00> : vector<128x16xf32>
    %31 = tpu.matmul %29, %30, %cst_14 {dimension_numbers = #tpu.dot_dimension_numbers<[1], [0], [0], [1], [0, 0, 1, 1], [], []>} : vector<128x16xf32>, vector<16x16xf32>, vector<128x16xf32> -> vector<128x16xf32>
    %c0_15 = arith.constant 0 : index
    %c0_16 = arith.constant 0 : index
    %32 = vector.load %arg7[%c0_15, %c0_16] : memref<1x16xf32, #tpu.memory_space<vmem>>, vector<1x16xf32>
    %33 = vector.broadcast %32 : vector<1x16xf32> to vector<128x16xf32>
    %34 = arith.addf %31, %33 : vector<128x16xf32>
    %cst_17 = arith.constant 0.000000e+00 : f32
    %35 = vector.broadcast %cst_17 : f32 to vector<128x16xf32>
    %36 = arith.maximumf %34, %35 : vector<128x16xf32>
    %c0_18 = arith.constant 0 : index
    %c0_19 = arith.constant 0 : index
    %37 = vector.load %arg8[%c0_18, %c0_19] : memref<16x48xf32, #tpu.memory_space<vmem>>, vector<16x48xf32>
    %cst_20 = arith.constant dense<0.000000e+00> : vector<128x48xf32>
    %38 = tpu.matmul %36, %37, %cst_20 {dimension_numbers = #tpu.dot_dimension_numbers<[1], [0], [0], [1], [0, 0, 1, 1], [], []>} : vector<128x16xf32>, vector<16x48xf32>, vector<128x48xf32> -> vector<128x48xf32>
    %c0_21 = arith.constant 0 : index
    %c0_22 = arith.constant 0 : index
    %39 = vector.load %arg9[%c0_21, %c0_22] : memref<1x48xf32, #tpu.memory_space<vmem>>, vector<1x48xf32>
    %40 = vector.broadcast %39 : vector<1x48xf32> to vector<128x48xf32>
    %41 = arith.addf %38, %40 : vector<128x48xf32>
    %42 = arith.negf %41 : vector<128x48xf32>
    %43 = math.exp %42 : vector<128x48xf32>
    %cst_23 = arith.constant 1.000000e+00 : f32
    %44 = vector.broadcast %cst_23 : f32 to vector<128x48xf32>
    %45 = arith.addf %44, %43 : vector<128x48xf32>
    %46 = arith.divf %44, %45 : vector<128x48xf32>
    %c0_24 = arith.constant 0 : index
    %c0_25 = arith.constant 0 : index
    %47 = vector.load %arg10[%c0_24, %c0_25] : memref<128x48xf32, #tpu.memory_space<vmem>>, vector<128x48xf32>
    tpu.vector_store %arg10[%c0_24, %c0_25], %46 {strides = array<i32>} : memref<128x48xf32, #tpu.memory_space<vmem>>, vector<128x48xf32>,
    return
  }
  func.func @transform_0(%arg0: i32) -> (i32, i32) {
    %c0_i32 = arith.constant 0 : i32
    %c0_i32_0 = arith.constant 0 : i32
    return %arg0, %c0_i32 : i32, i32
  }
  func.func @transform_1(%arg0: i32) -> (i32, i32) {
    %c0_i32 = arith.constant 0 : i32
    %c0_i32_0 = arith.constant 0 : i32
    %c0_i32_1 = arith.constant 0 : i32
    return %c0_i32, %c0_i32_0 : i32, i32
  }
  func.func @transform_2(%arg0: i32) -> (i32, i32) {
    %c0_i32 = arith.constant 0 : i32
    %c0_i32_0 = arith.constant 0 : i32
    %c0_i32_1 = arith.constant 0 : i32
    return %c0_i32, %c0_i32_0 : i32, i32
  }
  func.func @transform_3(%arg0: i32) -> (i32, i32) {
    %c0_i32 = arith.constant 0 : i32
    %c0_i32_0 = arith.constant 0 : i32
    %c0_i32_1 = arith.constant 0 : i32
    return %c0_i32, %c0_i32_0 : i32, i32
  }
  func.func @transform_4(%arg0: i32) -> (i32, i32) {
    %c0_i32 = arith.constant 0 : i32
    %c0_i32_0 = arith.constant 0 : i32
    %c0_i32_1 = arith.constant 0 : i32
    return %c0_i32, %c0_i32_0 : i32, i32
  }
  func.func @transform_5(%arg0: i32) -> (i32, i32) {
    %c0_i32 = arith.constant 0 : i32
    %c0_i32_0 = arith.constant 0 : i32
    %c0_i32_1 = arith.constant 0 : i32
    return %c0_i32, %c0_i32_0 : i32, i32
  }
  func.func @transform_6(%arg0: i32) -> (i32, i32) {
    %c0_i32 = arith.constant 0 : i32
    %c0_i32_0 = arith.constant 0 : i32
    %c0_i32_1 = arith.constant 0 : i32
    return %c0_i32, %c0_i32_0 : i32, i32
  }
  func.func @transform_7(%arg0: i32) -> (i32, i32) {
    %c0_i32 = arith.constant 0 : i32
    %c0_i32_0 = arith.constant 0 : i32
    %c0_i32_1 = arith.constant 0 : i32
    return %c0_i32, %c0_i32_0 : i32, i32
  }
  func.func @transform_8(%arg0: i32) -> (i32, i32) {
    %c0_i32 = arith.constant 0 : i32
    %c0_i32_0 = arith.constant 0 : i32
    %c0_i32_1 = arith.constant 0 : i32
    return %c0_i32, %c0_i32_0 : i32, i32
  }
  func.func @transform_9(%arg0: i32) -> (i32, i32) {
    %c0_i32 = arith.constant 0 : i32
    %c0_i32_0 = arith.constant 0 : i32
    return %arg0, %c0_i32 : i32, i32
  }
}

</mosaic_0001>

<bundles_post_ra>
// kernel: tpu_custom_call.1
= control target key start
LH: loop header
LB: loop body
LE: loop exit
PB: predicated region body
PF: predicated region fallthrough
CT: control target
= control target key end

     0   :  { %14 = vsyncpa [#allocation3], 0  ;;  %s1892_s30 = smov [#allocation2]   ;;  %s2548_s0 = inlined_call_operand.vmem [shape: f32[128,144], index: 0, kind: input, shape index: {}]   ;;  %s2549_s1 = inlined_call_operand.hbm [shape: f32[144,384], index: 1, kind: input, shape index: {}]   ;;  %s2550_s2 = inlined_call_operand.vmem [shape: f32[1,384], index: 2, kind: input, shape index: {}]   ;;  %s2551_s3 = inlined_call_operand.vmem [shape: f32[128,256], index: 3, kind: input, shape index: {}]   ;;  %s2552_s4 = inlined_call_operand.vmem [shape: f32[1,256], index: 4, kind: input, shape index: {}]   ;;  %s2553_s5 = inlined_call_operand.vmem [shape: f32[16,16], index: 5, kind: input, shape index: {}]   ;;  %s2554_s6 = inlined_call_operand.vmem [shape: f32[1,16], index: 6, kind: input, shape index: {}]   ;;  %s2555_s7 = inlined_call_operand.vmem [shape: f32[16,48], index: 7, kind: input, shape index: {}]   ;;  %s2556_s8 = inlined_call_operand.vmem [shape: f32[1,48], index: 8, kind: input, shape index: {}]   ;;  %s2557_s9 = inlined_call_operand.vmem [shape: f32[128,48], index: 9, kind: output, shape index: {}]  }
   0x1   :  { %s22_s10 = sshll.u32 %s1892_s30, 4  ;;  %s1868_s13 = scalar_lea.hbm %s2549_s1, 6912  ;;  %s23_s10 = int_to_ptr.vmem [resolvable:$true] %s22_s10 }
   0x2   :  { %p1869_p0 = scmp.ne.s32.totalorder %s2549_s1, %s1868_s13  ;;  %p1872_p1 = scmp.lt.u32.totalorder %s1868_s13, %s2549_s1 }
   0x4   :  { %p1874_p2 = pnand %p1872_p1, %p1869_p0 }
   0x6   :  { %1877 = shalt.err (!%p1874_p2)
}
   0x7   :  { %s1878_s18 = scalar_lea.vmem %s23_s10, 6912  ;;  %p1883_p4 = scmp.lt.s32.totalorder %s23_s10, %s23_s10 }
   0x8   :  { %p1879_p3 = scmp.ne.s32.totalorder %s23_s10, %s1878_s18  ;;  %p1884_p5 = scmp.lt.s32.totalorder %s1878_s18, %s1878_s18 }
   0xa   :  { %p1885_p6 = por %p1884_p5, %p1883_p4 }
   0xc   :  { %p1886_p7 = pnand %p1885_p6, %p1879_p3 }
   0xe   :  { %1889 = shalt.err (!%p1886_p7)
}
   0xf   :  { %s1893_s19 = smov 384   ;;  %s1894_s20 = smov 24  }
  0x10   :  { %28 = dma.hbm_to_vmem [thread:$0]  %s2549_s1, 6912, %s23_s10, [#allocation3], %s1893_s19, %s1893_s19, %s1894_s20  }
  0x11   :  { %1890 = dma.done.wait [#allocation3], 6912  }
  0x12   :  { %1891 = vsyncadd [#allocation3], 4294960384  ;;  %v1895_v0 = vmov 0.0|0.0   ;;  %v79_v1 = vld [vmem:[#allocation2 + $0x8] sm:$0xff]  ;;  %v82_v2 = vld [vmem:[#allocation2 + $0x20] sm:$0xff]  ;;  %vm149_vm0 = vcmask 130048  }
  0x13   :  { %1729 = vmatprep.subr.bf16.mxu1 %v1895_v0  ;;  %v78_v3 = vld [vmem:[#allocation2] sm:$0xff]  ;;  %v1693_v4 = vpack.c.bf16 %v82_v2, %v79_v1  ;;  %v81_v5 = vld [vmem:[#allocation2 + $0x18] sm:$0xff]  ;;  %v80_v6 = vld [vmem:[#allocation2 + $0x10] sm:$0xff]  ;;  %s1898_s20 = smov 32   ;;  %s1899_s24 = smov 16   ;;  %vm1497_vm1 = vcmask 392192  }
  0x14   :  { %v83_v7 = vld [vmem:[#allocation2 + $0x28] sm:$0xff]  ;;  %v1695_v8 = vpack.c.bf16 %v81_v5, %v78_v3  ;;  %v85_v10 = vld [vmem:[#allocation2 + $0x38] sm:$0xff]  ;;  %v88_v11 = vld [vmem:[#allocation2 + $0x50] sm:$0xff] }
  0x15   :  { %v1730_v9 = vpack.c.bf16 %v83_v7, %v80_v6  ;;  %v84_v12 = vld [vmem:[#allocation2 + $0x30] sm:$0xff]  ;;  %1694 = vmatprep.subr.bf16.mxu0 %v1693_v4  ;;  %v1697_v13 = vpack.c.bf16 %v88_v11, %v85_v10  ;;  %v87_v14 = vld [vmem:[#allocation2 + $0x48] sm:$0xff]  ;;  %v86_v15 = vld [vmem:[#allocation2 + $0x40] sm:$0xff] }
  0x16   :  { %v89_v16 = vld [vmem:[#allocation2 + $0x58] sm:$0xff]  ;;  %1696 = vmatpush1.bf16.msra.mxu0 %v1695_v8  ;;  %v1699_v17 = vpack.c.bf16 %v87_v14, %v84_v12  ;;  %v91_v19 = vld [vmem:[#allocation2 + $0x68] sm:$0xff]  ;;  %v94_v20 = vld [vmem:[#allocation2 + $0x80] sm:$0xff] }
  0x17   :  { %1731 = vmatpush1.bf16.msra.mxu1 %v1730_v9  ;;  %v1733_v18 = vpack.c.bf16 %v89_v16, %v86_v15  ;;  %v90_v21 = vld [vmem:[#allocation2 + $0x60] sm:$0xff]  ;;  %1698 = vmatprep.subr.bf16.mxu0 %v1697_v13  ;;  %v1701_v22 = vpack.c.bf16 %v94_v20, %v91_v19  ;;  %v93_v23 = vld [vmem:[#allocation2 + $0x78] sm:$0xff]  ;;  %v92_v24 = vld [vmem:[#allocation2 + $0x70] sm:$0xff] }
  0x18   :  { %1732 = vmatprep.subr.bf16.mxu1 %v1895_v0  ;;  %v95_v25 = vld [vmem:[#allocation2 + $0x88] sm:$0xff]  ;;  %v97_v26 = vld [vmem:[#allocation2 + $0x98] sm:$0xff]  ;;  %v100_v27 = vld [vmem:[#allocation2 + $0xb0] sm:$0xff]  ;;  %v1703_v28 = vpack.c.bf16 %v93_v23, %v90_v21 }
  0x19   :  { %v1736_v29 = vpack.c.bf16 %v95_v25, %v92_v24  ;;  %v96_v30 = vld [vmem:[#allocation2 + $0x90] sm:$0xff]  ;;  %v1705_v31 = vpack.c.bf16 %v100_v27, %v97_v26  ;;  %v99_v32 = vld [vmem:[#allocation2 + $0xa8] sm:$0xff]  ;;  %v98_v33 = vld [vmem:[#allocation2 + $0xa0] sm:$0xff] }
  0x1a   :  { %1700 = vmatpush1.bf16.msra.mxu0 %v1699_v17  ;;  %v101_v34 = vld [vmem:[#allocation2 + $0xb8] sm:$0xff]  ;;  %v103_v35 = vld [vmem:[#allocation2 + $0xc8] sm:$0xff]  ;;  %v106_v36 = vld [vmem:[#allocation2 + $0xe0] sm:$0xff]  ;;  %v1707_v37 = vpack.c.bf16 %v99_v32, %v96_v30 }
  0x1b   :  { %1734 = vmatpush1.bf16.msra.mxu1 %v1733_v18  ;;  %1702 = vmatprep.subr.bf16.mxu0 %v1701_v22  ;;  %v1739_v38 = vpack.c.bf16 %v101_v34, %v98_v33  ;;  %v102_v39 = vld [vmem:[#allocation2 + $0xc0] sm:$0xff]  ;;  %v1709_v40 = vpack.c.bf16 %v106_v36, %v103_v35  ;;  %v105_v41 = vld [vmem:[#allocation2 + $0xd8] sm:$0xff]  ;;  %v104_v42 = vld [vmem:[#allocation2 + $0xd0] sm:$0xff] }
  0x1c   :  { %1735 = vmatprep.subr.bf16.mxu1 %v1895_v0  ;;  %v107_v43 = vld [vmem:[#allocation2 + $0xe8] sm:$0xff]  ;;  %v109_v44 = vld [vmem:[#allocation2 + $0xf8] sm:$0xff]  ;;  %v112_v45 = vld [vmem:[#allocation2 + $0x110] sm:$0xff]  ;;  %v1711_v46 = vpack.c.bf16 %v105_v41, %v102_v39 }
  0x1d   :  { %v1742_v47 = vpack.c.bf16 %v107_v43, %v104_v42  ;;  %v108_v48 = vld [vmem:[#allocation2 + $0xf0] sm:$0xff]  ;;  %v111_v49 = vld [vmem:[#allocation2 + $0x108] sm:$0xff]  ;;  %v1713_v50 = vpack.c.bf16 %v112_v45, %v109_v44  ;;  %v110_v51 = vld [vmem:[#allocation2 + $0x100] sm:$0xff] }
  0x1e   :  { %1704 = vmatpush1.bf16.msra.mxu0 %v1703_v28  ;;  %v113_v52 = vld [vmem:[#allocation2 + $0x118] sm:$0xff]  ;;  %v47_v53 = vld [vmem:[%s2548_s0 + $0x8] sm:$0xff]  ;;  %v118_v55 = vld [vmem:[#allocation2 + $0x140] sm:$0xff]  ;;  %v1715_v56 = vpack.c.bf16 %v111_v49, %v108_v48 }
  0x1f   :  { %1737 = vmatpush1.bf16.msra.mxu1 %v1736_v29  ;;  %1706 = vmatprep.subr.bf16.mxu0 %v1705_v31  ;;  %v115_v54 = vld [vmem:[#allocation2 + $0x128] sm:$0xff]  ;;  %v1745_v57 = vpack.c.bf16 %v113_v52, %v110_v51  ;;  %v114_v58 = vld [vmem:[#allocation2 + $0x120] sm:$0xff]  ;;  %v117_v60 = vld [vmem:[#allocation2 + $0x138] sm:$0xff] }
  0x20   :  { %1738 = vmatprep.subr.bf16.mxu1 %v1895_v0  ;;  %1519 = vmatprep.mubr.msk.f32.mxu0 %vm149_vm0, %v47_v53  ;;  %v1717_v59 = vpack.c.bf16 %v118_v55, %v115_v54  ;;  %v116_v61 = vld [vmem:[#allocation2 + $0x130] sm:$0xff]  ;;  %v119_v62 = vld [vmem:[#allocation2 + $0x148] sm:$0xff]  ;;  %v121_v63 = vld [vmem:[#allocation2 + $0x158] sm:$0xff]  ;;  %v1719_v2 = vpack.c.bf16 %v117_v60, %v114_v58 }
  0x21   :  { %1535 = vmatprep.mubr.msk.f32.mxu1 %vm149_vm0, %v47_v53  ;;  %v124_v1 = vld [vmem:[#allocation2 + $0x170] sm:$0xff]  ;;  %v1748_v3 = vpack.c.bf16 %v119_v62, %v116_v61  ;;  %v123_v6 = vld [vmem:[#allocation2 + $0x168] sm:$0xff]  ;;  %v122_v7 = vld [vmem:[#allocation2 + $0x160] sm:$0xff] }
  0x22   :  { %1708 = vmatpush1.bf16.msra.mxu0 %v1707_v37  ;;  %v120_v4 = vld [vmem:[#allocation2 + $0x150] sm:$0xff]  ;;  %v1721_v5 = vpack.c.bf16 %v124_v1, %v121_v63  ;;  %v125_v8 = vld [vmem:[#allocation2 + $0x178] sm:$0xff]  ;;  %v127_v9 = vld [vmem:[#allocation2 + $0x188] sm:$0xff] }
  0x23   :  { %1740 = vmatpush1.bf16.msra.mxu1 %v1739_v38  ;;  %1710 = vmatprep.subr.bf16.mxu0 %v1709_v40  ;;  %v130_v10 = vld [vmem:[#allocation2 + $0x1a0] sm:$0xff]  ;;  %v1723_v11 = vpack.c.bf16 %v123_v6, %v120_v4  ;;  %v1751_v12 = vpack.c.bf16 %v125_v8, %v122_v7  ;;  %v129_v15 = vld [vmem:[#allocation2 + $0x198] sm:$0xff]  ;;  %v128_v16 = vld [vmem:[#allocation2 + $0x190] sm:$0xff] }
  0x24   :  { %1741 = vmatprep.subr.bf16.mxu1 %v1895_v0  ;;  %v126_v13 = vld [vmem:[#allocation2 + $0x180] sm:$0xff]  ;;  %v1725_v14 = vpack.c.bf16 %v130_v10, %v127_v9  ;;  %v131_v17 = vld [vmem:[#allocation2 + $0x1a8] sm:$0xff]  ;;  %v587_v19 = vld [vmem:[%s2551_s3 + $0x18] sm:$0xff] }
  0x25   :  { %v585_v18 = vld [vmem:[%s2551_s3 + $0x8] sm:$0xff]  ;;  %v1727_v20 = vpack.c.bf16 %v129_v15, %v126_v13  ;;  %v1754_v21 = vpack.c.bf16 %v131_v17, %v128_v16  ;;  %v584_v23 = vld [vmem:[%s2551_s3] sm:$0xff]  ;;  %v586_v24 = vld [vmem:[%s2551_s3 + $0x10] sm:$0xff] }
  0x26   :  { %1712 = vmatpush1.bf16.msra.mxu0 %v1711_v46  ;;  %v1756_v22 = vpack.c.bf16 %v587_v19, %v585_v18  ;;  %v589_v25 = vld [vmem:[%s2551_s3 + $0x28] sm:$0xff]  ;;  %v591_v26 = vld [vmem:[%s2551_s3 + $0x38] sm:$0xff]  ;;  %v1758_v28 = vpack.c.bf16 %v586_v24, %v584_v23  ;;  %v588_v30 = vld [vmem:[%s2551_s3 + $0x20] sm:$0xff] }
  0x27   :  { %1743 = vmatpush1.bf16.msra.mxu1 %v1742_v47  ;;  %1714 = vmatprep.subr.bf16.mxu0 %v1713_v50  ;;  %v49_v27 = vld [vmem:[%s2548_s0 + $0x18] sm:$0xff]  ;;  %v1760_v29 = vpack.c.bf16 %v591_v26, %v589_v25  ;;  %v590_v31 = vld [vmem:[%s2551_s3 + $0x30] sm:$0xff]  ;;  %v593_v32 = vld [vmem:[%s2551_s3 + $0x48] sm:$0xff] }
  0x28   :  { %1744 = vmatprep.subr.bf16.mxu1 %v1895_v0  ;;  %v595_v33 = vld [vmem:[%s2551_s3 + $0x58] sm:$0xff]  ;;  %v48_v34 = vld [vmem:[%s2548_s0 + $0x10] sm:$0xff]  ;;  %v51_v35 = vld [vmem:[%s2548_s0 + $0x28] sm:$0xff]  ;;  %v1762_v36 = vpack.c.bf16 %v590_v31, %v588_v30 }
  0x29   :  { %v1764_v37 = vpack.c.bf16 %v595_v33, %v593_v32  ;;  %v592_v38 = vld [vmem:[%s2551_s3 + $0x40] sm:$0xff]  ;;  %v594_v39 = vld [vmem:[%s2551_s3 + $0x50] sm:$0xff]  ;;  %v597_v40 = vld [vmem:[%s2551_s3 + $0x68] sm:$0xff] }
  0x2a   :  { %1716 = vmatpush1.bf16.msra.mxu0 %v1715_v56  ;;  %v599_v41 = vld [vmem:[%s2551_s3 + $0x78] sm:$0xff]  ;;  %v50_v42 = vld [vmem:[%s2548_s0 + $0x20] sm:$0xff]  ;;  %v1766_v44 = vpack.c.bf16 %v594_v39, %v592_v38  ;;  %v598_v47 = vld [vmem:[%s2551_s3 + $0x70] sm:$0xff] }
  0x2b   :  { %1746 = vmatpush1.bf16.msra.mxu1 %v1745_v57  ;;  %1718 = vmatprep.subr.bf16.mxu0 %v1717_v59  ;;  %v53_v43 = vld [vmem:[%s2548_s0 + $0x38] sm:$0xff]  ;;  %v1768_v45 = vpack.c.bf16 %v599_v41, %v597_v40  ;;  %v596_v46 = vld [vmem:[%s2551_s3 + $0x60] sm:$0xff]  ;;  %v601_v48 = vld [vmem:[%s2551_s3 + $0x88] sm:$0xff] }
  0x2c   :  { %1747 = vmatprep.subr.bf16.mxu1 %v1895_v0  ;;  %v603_v49 = vld [vmem:[%s2551_s3 + $0x98] sm:$0xff]  ;;  %v52_v50 = vld [vmem:[%s2548_s0 + $0x30] sm:$0xff]  ;;  %v55_v51 = vld [vmem:[%s2548_s0 + $0x48] sm:$0xff]  ;;  %v1770_v52 = vpack.c.bf16 %v598_v47, %v596_v46 }
  0x2d   :  { %v1772_v53 = vpack.c.bf16 %v603_v49, %v601_v48  ;;  %v600_v54 = vld [vmem:[%s2551_s3 + $0x80] sm:$0xff]  ;;  %v602_v55 = vld [vmem:[%s2551_s3 + $0x90] sm:$0xff]  ;;  %v605_v56 = vld [vmem:[%s2551_s3 + $0xa8] sm:$0xff] }
  0x2e   :  { %1720 = vmatpush1.bf16.msra.mxu0 %v1719_v2  ;;  %v607_v57 = vld [vmem:[%s2551_s3 + $0xb8] sm:$0xff]  ;;  %v54_v58 = vld [vmem:[%s2548_s0 + $0x40] sm:$0xff]  ;;  %v1774_v60 = vpack.c.bf16 %v602_v55, %v600_v54  ;;  %v606_v63 = vld [vmem:[%s2551_s3 + $0xb0] sm:$0xff] }
  0x2f   :  { %1749 = vmatpush1.bf16.msra.mxu1 %v1748_v3  ;;  %1722 = vmatprep.subr.bf16.mxu0 %v1721_v5  ;;  %v57_v59 = vld [vmem:[%s2548_s0 + $0x58] sm:$0xff]  ;;  %v1776_v61 = vpack.c.bf16 %v607_v57, %v605_v56  ;;  %v604_v62 = vld [vmem:[%s2551_s3 + $0xa0] sm:$0xff]  ;;  %v609_v1 = vld [vmem:[%s2551_s3 + $0xc8] sm:$0xff] }
  0x30   :  { %1750 = vmatprep.subr.bf16.mxu1 %v1895_v0  ;;  %v611_v2 = vld [vmem:[%s2551_s3 + $0xd8] sm:$0xff]  ;;  %v56_v3 = vld [vmem:[%s2548_s0 + $0x50] sm:$0xff]  ;;  %v59_v4 = vld [vmem:[%s2548_s0 + $0x68] sm:$0xff]  ;;  %v1778_v5 = vpack.c.bf16 %v606_v63, %v604_v62 }
  0x31   :  { %v1780_v6 = vpack.c.bf16 %v611_v2, %v609_v1  ;;  %v608_v7 = vld [vmem:[%s2551_s3 + $0xc0] sm:$0xff]  ;;  %v610_v8 = vld [vmem:[%s2551_s3 + $0xd0] sm:$0xff]  ;;  %v61_v10 = vld [vmem:[%s2548_s0 + $0x78] sm:$0xff] }
  0x32   :  { %1724 = vmatpush1.bf16.msra.mxu0 %v1723_v11  ;;  %v58_v9 = vld [vmem:[%s2548_s0 + $0x60] sm:$0xff]  ;;  %v1782_v11 = vpack.c.bf16 %v610_v8, %v608_v7  ;;  %v63_v13 = vld [vmem:[%s2548_s0 + $0x88] sm:$0xff]  ;;  %v65_v15 = vld [vmem:[%s2548_s0 + $0x98] sm:$0xff] }
  0x33   :  { %1752 = vmatpush1.bf16.msra.mxu1 %v1751_v12  ;;  %1726 = vmatprep.subr.bf16.mxu0 %v1725_v14  ;;  %v60_v12 = vld [vmem:[%s2548_s0 + $0x70] sm:$0xff]  ;;  %v62_v14 = vld [vmem:[%s2548_s0 + $0x80] sm:$0xff]  ;;  %v67_v17 = vld [vmem:[%s2548_s0 + $0xa8] sm:$0xff] }
  0x34   :  { %1753 = vmatprep.subr.bf16.mxu1 %v1895_v0  ;;  %v46_v0 = vld [vmem:[%s2548_s0] sm:$0xff]  ;;  %v64_v16 = vld [vmem:[%s2548_s0 + $0x90] sm:$0xff]  ;;  %v69_v19 = vld [vmem:[%s2548_s0 + $0xb8] sm:$0xff] }
  0x35   :  { %v66_v18 = vld [vmem:[%s2548_s0 + $0xa0] sm:$0xff]  ;;  %v73_v23 = vld [vmem:[%s2548_s0 + $0xd8] sm:$0xff]  ;;  %v72_v24 = vld [vmem:[%s2548_s0 + $0xd0] sm:$0xff] }
  0x36   :  { %1728 = vmatpush1.bf16.msra.mxu0 %v1727_v20  ;;  %v68_v20 = vld [vmem:[%s2548_s0 + $0xb0] sm:$0xff]  ;;  %v75_v25 = vld [vmem:[%s2548_s0 + $0xe8] sm:$0xff]  ;;  %v74_v26 = vld [vmem:[%s2548_s0 + $0xe0] sm:$0xff] }
  0x37   :  { %1755 = vmatpush1.bf16.msra.mxu1 %v1754_v21  ;;  %1757 = vmatprep.subr.bf16.mxu0 %v1756_v22  ;;  %v71_v21 = vld [vmem:[%s2548_s0 + $0xc8] sm:$0xff]  ;;  %v70_v22 = vld [vmem:[%s2548_s0 + $0xc0] sm:$0xff]  ;;  %v614_v32 = vld [vmem:[%s2551_s3 + $0xf0] sm:$0xff] }
  0x38   :  { %v612_v31 = vld [vmem:[%s2551_s3 + $0xe0] sm:$0xff] }
  0x39   :  { %263 = vmatmul.mubr.f32.vlgmr.msra.gmra.mrb[0].mxu0 %v46_v0  ;;  %v1786_v33 = vpack.c.bf16 %v614_v32, %v612_v31  ;;  %v132_v39 = vld [vmem:[%s2550_s2] sm:$0x7] }
  0x3a   :  { %424 = vmatmul.mubr.f32.vlgmr.msra.gmra.mrb[0].mxu1 %v46_v0  ;;  %1520 = vmatprep.mubr.msk.f32.mxu0 %vm149_vm0, %v49_v27  ;;  %v77_v0 = vld [vmem:[%s2548_s0 + $0xf8] sm:$0xff] }
  0x3b   :  { %1536 = vmatprep.mubr.msk.f32.mxu1 %vm149_vm0, %v49_v27  ;;  %1759 = vmatpush1.bf16.msra.mxu0 %v1758_v28  ;;  %v76_v27 = vld [vmem:[%s2548_s0 + $0xf0] sm:$0xff]  ;;  %v613_v28 = vld [vmem:[%s2551_s3 + $0xe8] sm:$0xff] }
  0x3c   :  { %1761 = vmatprep.subr.bf16.mxu0 %v1760_v29  ;;  %v615_v29 = vld [vmem:[%s2551_s3 + $0xf8] sm:$0xff] }
  0x3d   :  { %269 = vmatmul.mubr.f32.gmra.mrb[2].mxu0 %v48_v34  ;;  %v1784_v30 = vpack.c.bf16 %v615_v29, %v613_v28 }
  0x3e   :  { %429 = vmatmul.mubr.f32.gmra.mrb[2].mxu1 %v48_v34  ;;  %1521 = vmatprep.mubr.msk.f32.mxu0 %vm149_vm0, %v51_v35  ;;  %v1896_v34 = vmov 0.0  }
  0x3f   :  { %1537 = vmatprep.mubr.msk.f32.mxu1 %vm149_vm0, %v51_v35  ;;  %1763 = vmatpush1.bf16.msra.mxu0 %v1762_v36  ;;  %v134_v35 = vlaneseq }
  0x40   :  { %1765 = vmatprep.subr.bf16.mxu0 %v1764_v37 }
  0x41   :  { %275 = vmatmul.mubr.f32.gmra.mrb[4].mxu0 %v50_v42  ;;  %v2196_v36 = vshrl.u32 %v134_v35, 7 }
  0x42   :  { %434 = vmatmul.mubr.f32.gmra.mrb[4].mxu1 %v50_v42  ;;  %1522 = vmatprep.mubr.msk.f32.mxu0 %vm149_vm0, %v53_v43 }
  0x43   :  { %1538 = vmatprep.mubr.msk.f32.mxu1 %vm149_vm0, %v53_v43  ;;  %1767 = vmatpush1.bf16.msra.mxu0 %v1766_v44  ;;  %v136_v37 = vsub.s32 0, %v2196_v36  ;;  %v144_v38 = vsub.s32 2, %v2196_v36  ;;  %v140_v40 = vsub.s32 1, %v2196_v36 }
  0x44   :  { %1769 = vmatprep.subr.bf16.mxu0 %v1768_v45 }
  0x45   :  { %281 = vmatmul.mubr.f32.gmra.mrb[6].mxu0 %v52_v50  ;;  %v2206_v41 = vrot.slane %v132_v39, %v136_v37  ;;  %v2208_v42 = vrot.slane %v132_v39, %v144_v38  ;;  %v2212_v43 = vrot.slane %v132_v39, %v140_v40 }
  0x46   :  { %439 = vmatmul.mubr.f32.gmra.mrb[6].mxu1 %v52_v50  ;;  %1523 = vmatprep.mubr.msk.f32.mxu0 %vm149_vm0, %v55_v51 }
  0x47   :  { %1539 = vmatprep.mubr.msk.f32.mxu1 %vm149_vm0, %v55_v51  ;;  %1771 = vmatpush1.bf16.msra.mxu0 %v1770_v52 }
  0x48   :  { %1773 = vmatprep.subr.bf16.mxu0 %v1772_v53 }
  0x49   :  { %287 = vmatmul.mubr.f32.gmra.mrb[8].mxu0 %v54_v58 }
  0x4a   :  { %444 = vmatmul.mubr.f32.gmra.mrb[8].mxu1 %v54_v58  ;;  %1524 = vmatprep.mubr.msk.f32.mxu0 %vm149_vm0, %v57_v59 }
  0x4b   :  { %1540 = vmatprep.mubr.msk.f32.mxu1 %vm149_vm0, %v57_v59  ;;  %1775 = vmatpush1.bf16.msra.mxu0 %v1774_v60 }
  0x4c   :  { %1777 = vmatprep.subr.bf16.mxu0 %v1776_v61 }
  0x4d   :  { %293 = vmatmul.mubr.f32.gmra.mrb[10].mxu0 %v56_v3 }
  0x4e   :  { %449 = vmatmul.mubr.f32.gmra.mrb[10].mxu1 %v56_v3  ;;  %1525 = vmatprep.mubr.msk.f32.mxu0 %vm149_vm0, %v59_v4 }
  0x4f   :  { %1541 = vmatprep.mubr.msk.f32.mxu1 %vm149_vm0, %v59_v4  ;;  %1779 = vmatpush1.bf16.msra.mxu0 %v1778_v5 }
  0x50   :  { %1781 = vmatprep.subr.bf16.mxu0 %v1780_v6 }
  0x51   :  { %299 = vmatmul.mubr.f32.gmra.mrb[12].mxu0 %v58_v9 }
  0x52   :  { %454 = vmatmul.mubr.f32.gmra.mrb[12].mxu1 %v58_v9  ;;  %1526 = vmatprep.mubr.msk.f32.mxu0 %vm149_vm0, %v61_v10 }
  0x53   :  { %1542 = vmatprep.mubr.msk.f32.mxu1 %vm149_vm0, %v61_v10  ;;  %1783 = vmatpush1.bf16.msra.mxu0 %v1782_v11 }
  0x54   :  { %1785 = vmatprep.subr.bf16.mxu0 %v1784_v30 }
  0x55   :  { %305 = vmatmul.mubr.f32.gmra.mrb[14].mxu0 %v60_v12 }
  0x56   :  { %459 = vmatmul.mubr.f32.gmra.mrb[14].mxu1 %v60_v12  ;;  %1527 = vmatprep.mubr.msk.f32.mxu0 %vm149_vm0, %v63_v13 }
  0x57   :  { %1543 = vmatprep.mubr.msk.f32.mxu1 %vm149_vm0, %v63_v13  ;;  %1787 = vmatpush1.bf16.msra.mxu0 %v1786_v33 }
  0x59   :  { %311 = vmatmul.mubr.f32.gmra.mrb[16].mxu0 %v62_v14 }
  0x5a   :  { %464 = vmatmul.mubr.f32.gmra.mrb[16].mxu1 %v62_v14  ;;  %1528 = vmatprep.mubr.msk.f32.mxu0 %vm149_vm0, %v65_v15 }
  0x5b   :  { %1544 = vmatprep.mubr.msk.f32.mxu1 %vm149_vm0, %v65_v15 }
  0x5d   :  { %317 = vmatmul.mubr.f32.gmra.mrb[18].mxu0 %v64_v16 }
  0x5e   :  { %469 = vmatmul.mubr.f32.gmra.mrb[18].mxu1 %v64_v16  ;;  %1529 = vmatprep.mubr.msk.f32.mxu0 %vm149_vm0, %v67_v17 }
  0x5f   :  { %1545 = vmatprep.mubr.msk.f32.mxu1 %vm149_vm0, %v67_v17 }
  0x61   :  { %323 = vmatmul.mubr.f32.gmra.mrb[20].mxu0 %v66_v18 }
  0x62   :  { %474 = vmatmul.mubr.f32.gmra.mrb[20].mxu1 %v66_v18  ;;  %1530 = vmatprep.mubr.msk.f32.mxu0 %vm149_vm0, %v69_v19 }
  0x63   :  { %1546 = vmatprep.mubr.msk.f32.mxu1 %vm149_vm0, %v69_v19 }
  0x65   :  { %329 = vmatmul.mubr.f32.gmra.mrb[22].mxu0 %v68_v20 }
  0x66   :  { %479 = vmatmul.mubr.f32.gmra.mrb[22].mxu1 %v68_v20  ;;  %1531 = vmatprep.mubr.msk.f32.mxu0 %vm149_vm0, %v71_v21 }
  0x67   :  { %1547 = vmatprep.mubr.msk.f32.mxu1 %vm149_vm0, %v71_v21 }
  0x69   :  { %335 = vmatmul.mubr.f32.gmra.mrb[24].mxu0 %v70_v22 }
  0x6a   :  { %484 = vmatmul.mubr.f32.gmra.mrb[24].mxu1 %v70_v22  ;;  %1532 = vmatprep.mubr.msk.f32.mxu0 %vm149_vm0, %v73_v23 }
  0x6b   :  { %1548 = vmatprep.mubr.msk.f32.mxu1 %vm149_vm0, %v73_v23 }
  0x6d   :  { %341 = vmatmul.mubr.f32.gmra.mrb[26].mxu0 %v72_v24 }
  0x6e   :  { %489 = vmatmul.mubr.f32.gmra.mrb[26].mxu1 %v72_v24  ;;  %1533 = vmatprep.mubr.msk.f32.mxu0 %vm149_vm0, %v75_v25 }
  0x6f   :  { %1549 = vmatprep.mubr.msk.f32.mxu1 %vm149_vm0, %v75_v25 }
  0x71   :  { %347 = vmatmul.mubr.f32.gmra.mrb[28].mxu0 %v74_v26 }
  0x72   :  { %494 = vmatmul.mubr.f32.gmra.mrb[28].mxu1 %v74_v26  ;;  %1534 = vmatprep.mubr.msk.f32.mxu0 %vm149_vm0, %v77_v0 }
  0x73   :  { %1550 = vmatprep.mubr.msk.f32.mxu1 %vm149_vm0, %v77_v0 }
  0x75   :  { %353 = vmatmul.mubr.f32.gmra.mrb[30].mxu0 %v76_v27 }
  0x76   :  { %499 = vmatmul.mubr.f32.gmra.mrb[30].mxu1 %v76_v27  ;;  %692 = vmatprep.mubr.f32.mxu0 %v1896_v34 }
 0x10c   :  { %v264_v44 = vpop.f32.mrb[0].mxu0 }
 0x10d   :  { %v425_v45 = vpop.f32.mrb[0].mxu1  ;;  %v265_v46 = vadd.f32 %v264_v44, %v2206_v41  ;;  %v266_v47 = vpop.f32.mrb[1].mxu0 }
 0x10e   :  { %v426_v48 = vadd.f32 %v425_v45, %v2208_v42  ;;  %v427_v49 = vpop.f32.mrb[1].mxu1  ;;  %v267_v50 = vadd.f32 %v266_v47, %v2212_v43 }
 0x10f   :  { %v504_v51 = vmax.f32 %v265_v46, 0.0 }
 0x110   :  { %v505_v52 = vmax.f32 %v267_v50, 0.0  ;;  %v506_v53 = vmax.f32 %v426_v48, 0.0  ;;  %v270_v54 = vpop.f32.mrb[2].mxu0 }
 0x111   :  { %v430_v55 = vpop.f32.mrb[2].mxu1  ;;  %v271_v56 = vadd.f32 %v270_v54, %v2206_v41  ;;  %v272_v57 = vpop.f32.mrb[3].mxu0 }
 0x112   :  { %v431_v58 = vadd.f32 %v430_v55, %v2208_v42  ;;  %v432_v59 = vpop.f32.mrb[3].mxu1  ;;  %v552_v60 = vmax.f32 %v504_v51, %v505_v52  ;;  %v273_v61 = vadd.f32 %v272_v57, %v2212_v43 }
 0x113   :  { %v507_v62 = vmax.f32 %v271_v56, 0.0 }
 0x114   :  { %v568_v63 = vmax.f32 %v552_v60, %v506_v53  ;;  %v508_v1 = vmax.f32 %v273_v61, 0.0  ;;  %v509_v2 = vmax.f32 %v431_v58, 0.0  ;;  %v276_v3 = vpop.f32.mrb[4].mxu0 }
 0x115   :  { %v435_v4 = vpop.f32.mrb[4].mxu1  ;;  %v277_v5 = vadd.f32 %v276_v3, %v2206_v41  ;;  %v278_v6 = vpop.f32.mrb[5].mxu0 }
 0x116   :  { %v436_v7 = vadd.f32 %v435_v4, %v2208_v42  ;;  %v437_v8 = vpop.f32.mrb[5].mxu1  ;;  %v553_v9 = vmax.f32 %v507_v62, %v508_v1  ;;  %v279_v10 = vadd.f32 %v278_v6, %v2212_v43  ;;  %693 = vmatmul.mubr.f32.vlgmr.msra.gmra.mrb[32].mxu0 %v568_v63 }
 0x117   :  { %v510_v11 = vmax.f32 %v277_v5, 0.0  ;;  %698 = vmatprep.mubr.f32.mxu0 %v1896_v34 }
 0x118   :  { %v569_v12 = vmax.f32 %v553_v9, %v509_v2  ;;  %v511_v13 = vmax.f32 %v279_v10, 0.0  ;;  %v512_v14 = vmax.f32 %v436_v7, 0.0  ;;  %v282_v15 = vpop.f32.mrb[6].mxu0 }
 0x119   :  { %v440_v16 = vpop.f32.mrb[6].mxu1  ;;  %v283_v17 = vadd.f32 %v282_v15, %v2206_v41  ;;  %v284_v18 = vpop.f32.mrb[7].mxu0 }
 0x11a   :  { %v441_v19 = vadd.f32 %v440_v16, %v2208_v42  ;;  %v442_v20 = vpop.f32.mrb[7].mxu1  ;;  %v554_v21 = vmax.f32 %v510_v11, %v511_v13  ;;  %v285_v22 = vadd.f32 %v284_v18, %v2212_v43  ;;  %699 = vmatmul.mubr.f32.gmra.mrb[34].mxu0 %v569_v12 }
 0x11b   :  { %v513_v23 = vmax.f32 %v283_v17, 0.0  ;;  %704 = vmatprep.mubr.f32.mxu0 %v1896_v34 }
 0x11c   :  { %v570_v24 = vmax.f32 %v554_v21, %v512_v14  ;;  %v514_v25 = vmax.f32 %v285_v22, 0.0  ;;  %v515_v26 = vmax.f32 %v441_v19, 0.0  ;;  %v288_v0 = vpop.f32.mrb[8].mxu0 }
 0x11d   :  { %v445_v27 = vpop.f32.mrb[8].mxu1  ;;  %v289_v28 = vadd.f32 %v288_v0, %v2206_v41  ;;  %v290_v29 = vpop.f32.mrb[9].mxu0 }
 0x11e   :  { %v446_v30 = vadd.f32 %v445_v27, %v2208_v42  ;;  %v447_v31 = vpop.f32.mrb[9].mxu1  ;;  %v555_v32 = vmax.f32 %v513_v23, %v514_v25  ;;  %v291_v33 = vadd.f32 %v290_v29, %v2212_v43  ;;  %705 = vmatmul.mubr.f32.gmra.mrb[36].mxu0 %v570_v24 }
 0x11f   :  { %v516_v35 = vmax.f32 %v289_v28, 0.0  ;;  %710 = vmatprep.mubr.f32.mxu0 %v1896_v34 }
 0x120   :  { %v571_v38 = vmax.f32 %v555_v32, %v515_v26  ;;  %v517_v39 = vmax.f32 %v291_v33, 0.0  ;;  %v518_v44 = vmax.f32 %v446_v30, 0.0  ;;  %v294_v45 = vpop.f32.mrb[10].mxu0 }
 0x121   :  { %v450_v46 = vpop.f32.mrb[10].mxu1  ;;  %v295_v47 = vadd.f32 %v294_v45, %v2206_v41  ;;  %v296_v48 = vpop.f32.mrb[11].mxu0 }
 0x122   :  { %v451_v49 = vadd.f32 %v450_v46, %v2208_v42  ;;  %v452_v50 = vpop.f32.mrb[11].mxu1  ;;  %v556_v51 = vmax.f32 %v516_v35, %v517_v39  ;;  %v297_v52 = vadd.f32 %v296_v48, %v2212_v43  ;;  %711 = vmatmul.mubr.f32.gmra.mrb[38].mxu0 %v571_v38 }
 0x123   :  { %v519_v53 = vmax.f32 %v295_v47, 0.0  ;;  %716 = vmatprep.mubr.f32.mxu0 %v1896_v34 }
 0x124   :  { %v572_v54 = vmax.f32 %v556_v51, %v518_v44  ;;  %v520_v55 = vmax.f32 %v297_v52, 0.0  ;;  %v521_v56 = vmax.f32 %v451_v49, 0.0  ;;  %v300_v57 = vpop.f32.mrb[12].mxu0 }
 0x125   :  { %v455_v58 = vpop.f32.mrb[12].mxu1  ;;  %v301_v59 = vadd.f32 %v300_v57, %v2206_v41  ;;  %v302_v60 = vpop.f32.mrb[13].mxu0 }
 0x126   :  { %v456_v61 = vadd.f32 %v455_v58, %v2208_v42  ;;  %v457_v62 = vpop.f32.mrb[13].mxu1  ;;  %v557_v63 = vmax.f32 %v519_v53, %v520_v55  ;;  %v303_v1 = vadd.f32 %v302_v60, %v2212_v43  ;;  %717 = vmatmul.mubr.f32.gmra.mrb[40].mxu0 %v572_v54 }
 0x127   :  { %v522_v2 = vmax.f32 %v301_v59, 0.0  ;;  %722 = vmatprep.mubr.f32.mxu0 %v1896_v34 }
 0x128   :  { %v573_v3 = vmax.f32 %v557_v63, %v521_v56  ;;  %v523_v4 = vmax.f32 %v303_v1, 0.0  ;;  %v524_v5 = vmax.f32 %v456_v61, 0.0  ;;  %v306_v6 = vpop.f32.mrb[14].mxu0 }
 0x129   :  { %v460_v7 = vpop.f32.mrb[14].mxu1  ;;  %v307_v8 = vadd.f32 %v306_v6, %v2206_v41  ;;  %v308_v9 = vpop.f32.mrb[15].mxu0 }
 0x12a   :  { %v461_v10 = vadd.f32 %v460_v7, %v2208_v42  ;;  %v462_v11 = vpop.f32.mrb[15].mxu1  ;;  %v558_v12 = vmax.f32 %v522_v2, %v523_v4  ;;  %v309_v13 = vadd.f32 %v308_v9, %v2212_v43  ;;  %723 = vmatmul.mubr.f32.gmra.mrb[42].mxu0 %v573_v3 }
 0x12b   :  { %v525_v14 = vmax.f32 %v307_v8, 0.0  ;;  %728 = vmatprep.mubr.f32.mxu0 %v1896_v34 }
 0x12c   :  { %v574_v15 = vmax.f32 %v558_v12, %v524_v5  ;;  %v526_v16 = vmax.f32 %v309_v13, 0.0  ;;  %v527_v17 = vmax.f32 %v461_v10, 0.0  ;;  %v312_v18 = vpop.f32.mrb[16].mxu0 }
 0x12d   :  { %v465_v19 = vpop.f32.mrb[16].mxu1  ;;  %v313_v20 = vadd.f32 %v312_v18, %v2206_v41  ;;  %v314_v21 = vpop.f32.mrb[17].mxu0 }
 0x12e   :  { %v466_v22 = vadd.f32 %v465_v19, %v2208_v42  ;;  %v467_v23 = vpop.f32.mrb[17].mxu1  ;;  %v559_v24 = vmax.f32 %v525_v14, %v526_v16  ;;  %v315_v25 = vadd.f32 %v314_v21, %v2212_v43  ;;  %729 = vmatmul.mubr.f32.gmra.mrb[44].mxu0 %v574_v15 }
 0x12f   :  { %v528_v26 = vmax.f32 %v313_v20, 0.0  ;;  %734 = vmatprep.mubr.f32.mxu0 %v1896_v34 }
 0x130   :  { %v575_v0 = vmax.f32 %v559_v24, %v527_v17  ;;  %v529_v27 = vmax.f32 %v315_v25, 0.0  ;;  %v530_v28 = vmax.f32 %v466_v22, 0.0  ;;  %v318_v29 = vpop.f32.mrb[18].mxu0 }
 0x131   :  { %v470_v30 = vpop.f32.mrb[18].mxu1  ;;  %v319_v31 = vadd.f32 %v318_v29, %v2206_v41  ;;  %v320_v32 = vpop.f32.mrb[19].mxu0 }
 0x132   :  { %v471_v33 = vadd.f32 %v470_v30, %v2208_v42  ;;  %v472_v35 = vpop.f32.mrb[19].mxu1  ;;  %v560_v38 = vmax.f32 %v528_v26, %v529_v27  ;;  %v321_v39 = vadd.f32 %v320_v32, %v2212_v43  ;;  %735 = vmatmul.mubr.f32.gmra.mrb[46].mxu0 %v575_v0 }
 0x133   :  { %v531_v44 = vmax.f32 %v319_v31, 0.0  ;;  %740 = vmatprep.mubr.f32.mxu0 %v1896_v34 }
 0x134   :  { %v576_v45 = vmax.f32 %v560_v38, %v530_v28  ;;  %v532_v46 = vmax.f32 %v321_v39, 0.0  ;;  %v533_v47 = vmax.f32 %v471_v33, 0.0  ;;  %v324_v48 = vpop.f32.mrb[20].mxu0 }
 0x135   :  { %v475_v49 = vpop.f32.mrb[20].mxu1  ;;  %v325_v50 = vadd.f32 %v324_v48, %v2206_v41  ;;  %v326_v51 = vpop.f32.mrb[21].mxu0 }
 0x136   :  { %v476_v52 = vadd.f32 %v475_v49, %v2208_v42  ;;  %v477_v53 = vpop.f32.mrb[21].mxu1  ;;  %v561_v54 = vmax.f32 %v531_v44, %v532_v46  ;;  %v327_v55 = vadd.f32 %v326_v51, %v2212_v43  ;;  %741 = vmatmul.mubr.f32.gmra.mrb[48].mxu0 %v576_v45 }
 0x137   :  { %v534_v56 = vmax.f32 %v325_v50, 0.0  ;;  %746 = vmatprep.mubr.f32.mxu0 %v1896_v34 }
 0x138   :  { %v577_v57 = vmax.f32 %v561_v54, %v533_v47  ;;  %v535_v58 = vmax.f32 %v327_v55, 0.0  ;;  %v536_v59 = vmax.f32 %v476_v52, 0.0  ;;  %v330_v60 = vpop.f32.mrb[22].mxu0 }
 0x139   :  { %v480_v61 = vpop.f32.mrb[22].mxu1  ;;  %v331_v62 = vadd.f32 %v330_v60, %v2206_v41  ;;  %v332_v63 = vpop.f32.mrb[23].mxu0 }
 0x13a   :  { %v481_v1 = vadd.f32 %v480_v61, %v2208_v42  ;;  %v482_v2 = vpop.f32.mrb[23].mxu1  ;;  %v562_v3 = vmax.f32 %v534_v56, %v535_v58  ;;  %v333_v4 = vadd.f32 %v332_v63, %v2212_v43  ;;  %747 = vmatmul.mubr.f32.gmra.mrb[50].mxu0 %v577_v57 }
 0x13b   :  { %v537_v5 = vmax.f32 %v331_v62, 0.0  ;;  %752 = vmatprep.mubr.f32.mxu0 %v1896_v34 }
 0x13c   :  { %v578_v6 = vmax.f32 %v562_v3, %v536_v59  ;;  %v538_v7 = vmax.f32 %v333_v4, 0.0  ;;  %v539_v8 = vmax.f32 %v481_v1, 0.0  ;;  %v336_v9 = vpop.f32.mrb[24].mxu0 }
 0x13d   :  { %v485_v10 = vpop.f32.mrb[24].mxu1  ;;  %v337_v11 = vadd.f32 %v336_v9, %v2206_v41  ;;  %v338_v12 = vpop.f32.mrb[25].mxu0 }
 0x13e   :  { %v486_v13 = vadd.f32 %v485_v10, %v2208_v42  ;;  %v487_v14 = vpop.f32.mrb[25].mxu1  ;;  %v563_v15 = vmax.f32 %v537_v5, %v538_v7  ;;  %v339_v16 = vadd.f32 %v338_v12, %v2212_v43  ;;  %753 = vmatmul.mubr.f32.gmra.mrb[52].mxu0 %v578_v6 }
 0x13f   :  { %v540_v17 = vmax.f32 %v337_v11, 0.0  ;;  %758 = vmatprep.mubr.f32.mxu0 %v1896_v34 }
 0x140   :  { %v579_v18 = vmax.f32 %v563_v15, %v539_v8  ;;  %v541_v19 = vmax.f32 %v339_v16, 0.0  ;;  %v542_v20 = vmax.f32 %v486_v13, 0.0  ;;  %v342_v21 = vpop.f32.mrb[26].mxu0 }
 0x141   :  { %v490_v22 = vpop.f32.mrb[26].mxu1  ;;  %v343_v23 = vadd.f32 %v342_v21, %v2206_v41  ;;  %v344_v24 = vpop.f32.mrb[27].mxu0 }
 0x142   :  { %v491_v25 = vadd.f32 %v490_v22, %v2208_v42  ;;  %v492_v26 = vpop.f32.mrb[27].mxu1  ;;  %v564_v0 = vmax.f32 %v540_v17, %v541_v19  ;;  %v345_v27 = vadd.f32 %v344_v24, %v2212_v43  ;;  %759 = vmatmul.mubr.f32.gmra.mrb[54].mxu0 %v579_v18 }
 0x143   :  { %v543_v28 = vmax.f32 %v343_v23, 0.0  ;;  %764 = vmatprep.mubr.f32.mxu0 %v1896_v34 }
 0x144   :  { %v580_v29 = vmax.f32 %v564_v0, %v542_v20  ;;  %v544_v30 = vmax.f32 %v345_v27, 0.0  ;;  %v545_v31 = vmax.f32 %v491_v25, 0.0  ;;  %v348_v32 = vpop.f32.mrb[28].mxu0 }
 0x145   :  { %v495_v33 = vpop.f32.mrb[28].mxu1  ;;  %v349_v35 = vadd.f32 %v348_v32, %v2206_v41  ;;  %v350_v38 = vpop.f32.mrb[29].mxu0 }
 0x146   :  { %v496_v39 = vadd.f32 %v495_v33, %v2208_v42  ;;  %v497_v44 = vpop.f32.mrb[29].mxu1  ;;  %v565_v45 = vmax.f32 %v543_v28, %v544_v30  ;;  %v351_v46 = vadd.f32 %v350_v38, %v2212_v43  ;;  %765 = vmatmul.mubr.f32.gmra.mrb[56].mxu0 %v580_v29 }
 0x147   :  { %v546_v47 = vmax.f32 %v349_v35, 0.0  ;;  %770 = vmatprep.mubr.f32.mxu0 %v1896_v34 }
 0x148   :  { %v581_v48 = vmax.f32 %v565_v45, %v545_v31  ;;  %v547_v49 = vmax.f32 %v351_v46, 0.0  ;;  %v548_v50 = vmax.f32 %v496_v39, 0.0  ;;  %v354_v51 = vpop.f32.mrb[30].mxu0 }
 0x149   :  { %v500_v52 = vpop.f32.mrb[30].mxu1  ;;  %v355_v53 = vadd.f32 %v354_v51, %v2206_v41  ;;  %v356_v54 = vpop.f32.mrb[31].mxu0  ;;  %v616_v41 = vld [vmem:[%s2552_s4] sm:$0x3]  ;;  %s1897_s4 = smov 64  }
 0x14a   :  { %v501_v55 = vadd.f32 %v500_v52, %v2208_v42  ;;  %v502_v56 = vpop.f32.mrb[31].mxu1  ;;  %v566_v57 = vmax.f32 %v546_v47, %v547_v49  ;;  %v357_v58 = vadd.f32 %v356_v54, %v2212_v43  ;;  %771 = vmatmul.mubr.f32.gmra.mrb[58].mxu0 %v581_v48  ;;  %v2282_v42 = vrot.slane %v616_v41, %v136_v37 }
 0x14b   :  { %v549_v59 = vmax.f32 %v355_v53, 0.0  ;;  %776 = vmatprep.mubr.f32.mxu0 %v1896_v34  ;;  %v2286_v43 = vrot.slane %v616_v41, %v140_v40 }
 0x14c   :  { %v582_v60 = vmax.f32 %v566_v57, %v548_v50  ;;  %v550_v61 = vmax.f32 %v357_v58, 0.0  ;;  %v551_v62 = vmax.f32 %v501_v55, 0.0 }
 0x14e   :  { %v567_v63 = vmax.f32 %v549_v59, %v550_v61  ;;  %777 = vmatmul.mubr.f32.gmra.mrb[60].mxu0 %v582_v60 }
 0x14f   :  { %782 = vmatprep.mubr.f32.mxu0 %v1896_v34 }
 0x150   :  { %v583_v1 = vmax.f32 %v567_v63, %v551_v62 }
 0x152   :  { %783 = vmatmul.mubr.f32.gmra.mrb[62].mxu0 %v583_v1 }
 0x1e9   :  { %v694_v2 = vpop.f32.mrb[32].mxu0 }
 0x1ea   :  { %v695_v3 = vadd.f32 %v694_v2, %v2282_v42  ;;  %v696_v4 = vpop.f32.mrb[33].mxu0 }
 0x1eb   :  { %v697_v34 = vadd.f32 %v696_v4, %v2286_v43 }
 0x1ec   :  { %v789_v5 = vmax.f32 %v695_v3, 0.0 }
 0x1ed   :  { %v790_v6 = vmax.f32 %v697_v34, 0.0  ;;  %v700_v7 = vpop.f32.mrb[34].mxu0 }
 0x1ee   :  { %v701_v8 = vadd.f32 %v700_v7, %v2282_v42  ;;  %v702_v9 = vpop.f32.mrb[35].mxu0 }
 0x1ef   :  { %v703_v10 = vadd.f32 %v702_v9, %v2286_v43  ;;  %v2292_v37 = vmax.f32 %v789_v5, %v790_v6 }
 0x1f0   :  { %v791_v11 = vmax.f32 %v701_v8, 0.0 }
 0x1f1   :  { %v792_v36 = vmax.f32 %v703_v10, 0.0  ;;  %v706_v40 = vpop.f32.mrb[36].mxu0  ;;  %837 = vrot.lane.b32.xlu0 %v2292_v37, %s1897_s4 }
 0x1f2   :  { %v707_v12 = vadd.f32 %v706_v40, %v2282_v42  ;;  %v708_v13 = vpop.f32.mrb[37].mxu0 }
 0x1f3   :  { %v2297_v14 = vmax.f32 %v791_v11, %v792_v36  ;;  %v709_v15 = vadd.f32 %v708_v13, %v2286_v43 }
 0x1f4   :  { %v793_v16 = vmax.f32 %v707_v12, 0.0 }
 0x1f5   :  { %v794_v17 = vmax.f32 %v709_v15, 0.0  ;;  %v712_v18 = vpop.f32.mrb[38].mxu0  ;;  %839 = vrot.lane.b32.xlu0 %v2297_v14, %s1897_s4 }
 0x1f6   :  { %v713_v19 = vadd.f32 %v712_v18, %v2282_v42  ;;  %v714_v20 = vpop.f32.mrb[39].mxu0 }
 0x1f7   :  { %v715_v21 = vadd.f32 %v714_v20, %v2286_v43  ;;  %v2304_v22 = vmax.f32 %v793_v16, %v794_v17 }
 0x1f8   :  { %v795_v23 = vmax.f32 %v713_v19, 0.0 }
 0x1f9   :  { %v796_v24 = vmax.f32 %v715_v21, 0.0  ;;  %v718_v25 = vpop.f32.mrb[40].mxu0  ;;  %841 = vrot.lane.b32.xlu1 %v2304_v22, %s1897_s4 }
 0x1fa   :  { %v719_v26 = vadd.f32 %v718_v25, %v2282_v42  ;;  %v720_v0 = vpop.f32.mrb[41].mxu0 }
 0x1fb   :  { %v2309_v27 = vmax.f32 %v795_v23, %v796_v24  ;;  %v721_v28 = vadd.f32 %v720_v0, %v2286_v43 }
 0x1fc   :  { %v797_v29 = vmax.f32 %v719_v26, 0.0 }
 0x1fd   :  { %v798_v30 = vmax.f32 %v721_v28, 0.0  ;;  %v724_v31 = vpop.f32.mrb[42].mxu0  ;;  %843 = vrot.lane.b32.xlu1 %v2309_v27, %s1897_s4 }
 0x1fe   :  { %v725_v32 = vadd.f32 %v724_v31, %v2282_v42  ;;  %v726_v33 = vpop.f32.mrb[43].mxu0 }
 0x1ff   :  { %v2315_v35 = vmax.f32 %v797_v29, %v798_v30  ;;  %v727_v38 = vadd.f32 %v726_v33, %v2286_v43 }
 0x200   :  { %v799_v39 = vmax.f32 %v725_v32, 0.0 }
 0x201   :  { %v800_v44 = vmax.f32 %v727_v38, 0.0  ;;  %v730_v45 = vpop.f32.mrb[44].mxu0  ;;  %845 = vrot.lane.b32.xlu0 %v2315_v35, %s1897_s4 }
 0x202   :  { %v731_v46 = vadd.f32 %v730_v45, %v2282_v42  ;;  %v732_v47 = vpop.f32.mrb[45].mxu0 }
 0x203   :  { %v2321_v48 = vmax.f32 %v799_v39, %v800_v44  ;;  %v733_v49 = vadd.f32 %v732_v47, %v2286_v43 }
 0x204   :  { %v801_v50 = vmax.f32 %v731_v46, 0.0 }
 0x205   :  { %v802_v51 = vmax.f32 %v733_v49, 0.0  ;;  %v736_v52 = vpop.f32.mrb[46].mxu0  ;;  %847 = vrot.lane.b32.xlu1 %v2321_v48, %s1897_s4 }
 0x206   :  { %v737_v53 = vadd.f32 %v736_v52, %v2282_v42  ;;  %v738_v54 = vpop.f32.mrb[47].mxu0 }
 0x207   :  { %v2327_v55 = vmax.f32 %v801_v50, %v802_v51  ;;  %v739_v56 = vadd.f32 %v738_v54, %v2286_v43 }
 0x208   :  { %v803_v57 = vmax.f32 %v737_v53, 0.0 }
 0x209   :  { %v804_v58 = vmax.f32 %v739_v56, 0.0  ;;  %v742_v59 = vpop.f32.mrb[48].mxu0  ;;  %849 = vrot.lane.b32.xlu0 %v2327_v55, %s1897_s4 }
 0x20a   :  { %v743_v60 = vadd.f32 %v742_v59, %v2282_v42  ;;  %v744_v61 = vpop.f32.mrb[49].mxu0 }
 0x20b   :  { %v2333_v62 = vmax.f32 %v803_v57, %v804_v58  ;;  %v745_v63 = vadd.f32 %v744_v61, %v2286_v43 }
 0x20c   :  { %v805_v1 = vmax.f32 %v743_v60, 0.0 }
 0x20d   :  { %v806_v41 = vmax.f32 %v745_v63, 0.0  ;;  %v748_v2 = vpop.f32.mrb[50].mxu0  ;;  %851 = vrot.lane.b32.xlu1 %v2333_v62, %s1897_s4 }
 0x20e   :  { %v749_v3 = vadd.f32 %v748_v2, %v2282_v42  ;;  %v750_v4 = vpop.f32.mrb[51].mxu0 }
 0x20f   :  { %v2339_v34 = vmax.f32 %v805_v1, %v806_v41  ;;  %v751_v5 = vadd.f32 %v750_v4, %v2286_v43 }
 0x210   :  { %v807_v6 = vmax.f32 %v749_v3, 0.0 }
 0x211   :  { %v808_v7 = vmax.f32 %v751_v5, 0.0  ;;  %v754_v8 = vpop.f32.mrb[52].mxu0  ;;  %853 = vrot.lane.b32.xlu0 %v2339_v34, %s1897_s4 }
 0x212   :  { %v755_v9 = vadd.f32 %v754_v8, %v2282_v42  ;;  %v756_v10 = vpop.f32.mrb[53].mxu0 }
 0x213   :  { %v2345_v11 = vmax.f32 %v807_v6, %v808_v7  ;;  %v757_v36 = vadd.f32 %v756_v10, %v2286_v43 }
 0x214   :  { %v809_v40 = vmax.f32 %v755_v9, 0.0 }
 0x215   :  { %v810_v12 = vmax.f32 %v757_v36, 0.0  ;;  %v760_v13 = vpop.f32.mrb[54].mxu0  ;;  %855 = vrot.lane.b32.xlu1 %v2345_v11, %s1897_s4 }
 0x216   :  { %v761_v15 = vadd.f32 %v760_v13, %v2282_v42  ;;  %v762_v16 = vpop.f32.mrb[55].mxu0  ;;  %v982_v13 = vld [vmem:[%s2553_s5 + $0x8] sm:$0xff] }
 0x217   :  { %v2351_v17 = vmax.f32 %v809_v40, %v810_v12  ;;  %v763_v18 = vadd.f32 %v762_v16, %v2286_v43 }
 0x218   :  { %v811_v19 = vmax.f32 %v761_v15, 0.0 }
 0x219   :  { %v812_v20 = vmax.f32 %v763_v18, 0.0  ;;  %v766_v21 = vpop.f32.mrb[56].mxu0  ;;  %857 = vrot.lane.b32.xlu0 %v2351_v17, %s1897_s4 }
 0x21a   :  { %v767_v23 = vadd.f32 %v766_v21, %v2282_v42  ;;  %v768_v24 = vpop.f32.mrb[57].mxu0 }
 0x21b   :  { %v2357_v25 = vmax.f32 %v811_v19, %v812_v20  ;;  %v769_v26 = vadd.f32 %v768_v24, %v2286_v43 }
 0x21c   :  { %v813_v0 = vmax.f32 %v767_v23, 0.0 }
 0x21d   :  { %v814_v28 = vmax.f32 %v769_v26, 0.0  ;;  %v772_v29 = vpop.f32.mrb[58].mxu0  ;;  %859 = vrot.lane.b32.xlu1 %v2357_v25, %s1897_s4 }
 0x21e   :  { %v773_v30 = vadd.f32 %v772_v29, %v2282_v42  ;;  %v774_v31 = vpop.f32.mrb[59].mxu0 }
 0x21f   :  { %v833_v32 = vmax.f32 %v813_v0, %v814_v28  ;;  %v775_v33 = vadd.f32 %v774_v31, %v2286_v43 }
 0x220   :  { %v815_v38 = vmax.f32 %v773_v30, 0.0 }
 0x221   :  { %v816_v39 = vmax.f32 %v775_v33, 0.0  ;;  %v778_v44 = vpop.f32.mrb[60].mxu0  ;;  %861 = vrot.lane.b32.xlu0 %v833_v32, %s1897_s4 }
 0x222   :  { %v779_v45 = vadd.f32 %v778_v44, %v2282_v42  ;;  %v780_v46 = vpop.f32.mrb[61].mxu0 }
 0x223   :  { %v834_v47 = vmax.f32 %v815_v38, %v816_v39  ;;  %v781_v49 = vadd.f32 %v780_v46, %v2286_v43 }
 0x224   :  { %v817_v50 = vmax.f32 %v779_v45, 0.0 }
 0x225   :  { %v818_v51 = vmax.f32 %v781_v49, 0.0  ;;  %v784_v52 = vpop.f32.mrb[62].mxu0  ;;  %863 = vrot.lane.b32.xlu1 %v834_v47, %s1897_s4 }
 0x226   :  { %v785_v53 = vadd.f32 %v784_v52, %v2282_v42  ;;  %v786_v54 = vpop.f32.mrb[63].mxu0 }
 0x227   :  { %v835_v56 = vmax.f32 %v817_v50, %v818_v51  ;;  %v787_v57 = vadd.f32 %v786_v54, %v2286_v43 }
 0x228   :  { %v819_v58 = vmax.f32 %v785_v53, 0.0 }
 0x229   :  { %v820_v59 = vmax.f32 %v787_v57, 0.0  ;;  %865 = vrot.lane.b32.xlu0 %v835_v56, %s1897_s4 }
 0x22b   :  { %v836_v60 = vmax.f32 %v819_v58, %v820_v59 }
 0x22d   :  { %867 = vrot.lane.b32.xlu1 %v836_v60, %s1897_s4 }
 0x263   :  { %v838_v61 = vpop.permute.xlu0 %837 }
 0x264   :  { %v869_v63 = vmax.f32 %v2292_v37, %v838_v61 }
 0x266   :  { %885 = vrot.lane.b32.xlu0 %v869_v63, %s1898_s20 }
 0x267   :  { %v840_v1 = vpop.permute.xlu0 %839 }
 0x268   :  { %v870_v42 = vmax.f32 %v2297_v14, %v840_v1 }
 0x26a   :  { %887 = vrot.lane.b32.xlu1 %v870_v42, %s1898_s20 }
 0x26b   :  { %v842_v41 = vpop.permute.xlu1 %841 }
 0x26c   :  { %v871_v43 = vmax.f32 %v2304_v22, %v842_v41 }
 0x26e   :  { %889 = vrot.lane.b32.xlu0 %v871_v43, %s1898_s20 }
 0x26f   :  { %v844_v2 = vpop.permute.xlu1 %843 }
 0x270   :  { %v872_v3 = vmax.f32 %v2309_v27, %v844_v2 }
 0x272   :  { %891 = vrot.lane.b32.xlu1 %v872_v3, %s1898_s20 }
 0x273   :  { %v846_v4 = vpop.permute.xlu0 %845 }
 0x274   :  { %v873_v37 = vmax.f32 %v2315_v35, %v846_v4 }
 0x276   :  { %893 = vrot.lane.b32.xlu0 %v873_v37, %s1898_s20 }
 0x277   :  { %v848_v5 = vpop.permute.xlu1 %847 }
 0x278   :  { %v874_v14 = vmax.f32 %v2321_v48, %v848_v5 }
 0x27a   :  { %895 = vrot.lane.b32.xlu1 %v874_v14, %s1898_s20 }
 0x27b   :  { %v850_v6 = vpop.permute.xlu0 %849 }
 0x27c   :  { %v875_v22 = vmax.f32 %v2327_v55, %v850_v6 }
 0x27e   :  { %897 = vrot.lane.b32.xlu0 %v875_v22, %s1898_s20 }
 0x27f   :  { %v852_v7 = vpop.permute.xlu1 %851 }
 0x280   :  { %v876_v27 = vmax.f32 %v2333_v62, %v852_v7 }
 0x282   :  { %899 = vrot.lane.b32.xlu1 %v876_v27, %s1898_s20 }
 0x283   :  { %v854_v8 = vpop.permute.xlu0 %853 }
 0x284   :  { %v877_v35 = vmax.f32 %v2339_v34, %v854_v8 }
 0x286   :  { %901 = vrot.lane.b32.xlu0 %v877_v35, %s1898_s20 }
 0x287   :  { %v856_v9 = vpop.permute.xlu1 %855 }
 0x288   :  { %v878_v48 = vmax.f32 %v2345_v11, %v856_v9  ;;  %v981_v11 = vld [vmem:[%s2553_s5] sm:$0xff] }
 0x289   :  { %v1788_v16 = vpack.c.bf16 %v982_v13, %v981_v11 }
 0x28a   :  { %903 = vrot.lane.b32.xlu1 %v878_v48, %s1898_s20 }
 0x28b   :  { %v858_v10 = vpop.permute.xlu0 %857  ;;  %1789 = vmatprep.subr.bf16.mxu1 %v1788_v16 }
 0x28c   :  { %v879_v55 = vmax.f32 %v2351_v17, %v858_v10  ;;  %1791 = vmatpush3.bf16.msra.mxu1 %v1788_v16 }
 0x28e   :  { %905 = vrot.lane.b32.xlu0 %v879_v55, %s1898_s20 }
 0x28f   :  { %v860_v36 = vpop.permute.xlu1 %859 }
 0x290   :  { %v880_v62 = vmax.f32 %v2357_v25, %v860_v36 }
 0x292   :  { %907 = vrot.lane.b32.xlu1 %v880_v62, %s1898_s20 }
 0x293   :  { %v862_v40 = vpop.permute.xlu0 %861 }
 0x294   :  { %v881_v12 = vmax.f32 %v833_v32, %v862_v40 }
 0x296   :  { %909 = vrot.lane.b32.xlu0 %v881_v12, %s1898_s20 }
 0x297   :  { %v864_v34 = vpop.permute.xlu1 %863 }
 0x298   :  { %v882_v15 = vmax.f32 %v834_v47, %v864_v34 }
 0x29a   :  { %911 = vrot.lane.b32.xlu1 %v882_v15, %s1898_s20 }
 0x29b   :  { %v866_v17 = vpop.permute.xlu0 %865 }
 0x29c   :  { %v883_v18 = vmax.f32 %v835_v56, %v866_v17 }
 0x29e   :  { %913 = vrot.lane.b32.xlu0 %v883_v18, %s1898_s20 }
 0x29f   :  { %v868_v19 = vpop.permute.xlu1 %867 }
 0x2a0   :  { %v884_v20 = vmax.f32 %v836_v60, %v868_v19 }
 0x2a2   :  { %915 = vrot.lane.b32.xlu1 %v884_v20, %s1898_s20 }
 0x2d8   :  { %v886_v21 = vpop.permute.xlu0 %885 }
 0x2d9   :  { %v917_v23 = vmax.f32 %v869_v63, %v886_v21  ;;  %v1199_v21 = vld [vmem:[%s2555_s7] sm:$0xff] }
 0x2db   :  { %933 = vrot.lane.b32.xlu0 %v917_v23, %s1899_s24 }
 0x2dc   :  { %v888_v24 = vpop.permute.xlu1 %887 }
 0x2dd   :  { %v918_v25 = vmax.f32 %v870_v42, %v888_v24 }
 0x2df   :  { %935 = vrot.lane.b32.xlu1 %v918_v25, %s1899_s24 }
 0x2e0   :  { %v890_v26 = vpop.permute.xlu0 %889 }
 0x2e1   :  { %v919_v0 = vmax.f32 %v871_v43, %v890_v26 }
 0x2e3   :  { %937 = vrot.lane.b32.xlu0 %v919_v0, %s1899_s24 }
 0x2e4   :  { %v892_v28 = vpop.permute.xlu1 %891 }
 0x2e5   :  { %v920_v29 = vmax.f32 %v872_v3, %v892_v28 }
 0x2e7   :  { %939 = vrot.lane.b32.xlu1 %v920_v29, %s1899_s24 }
 0x2e8   :  { %v894_v30 = vpop.permute.xlu0 %893 }
 0x2e9   :  { %v921_v31 = vmax.f32 %v873_v37, %v894_v30 }
 0x2eb   :  { %941 = vrot.lane.b32.xlu0 %v921_v31, %s1899_s24 }
 0x2ec   :  { %v896_v32 = vpop.permute.xlu1 %895 }
 0x2ed   :  { %v922_v33 = vmax.f32 %v874_v14, %v896_v32 }
 0x2ef   :  { %943 = vrot.lane.b32.xlu1 %v922_v33, %s1899_s24 }
 0x2f0   :  { %v898_v38 = vpop.permute.xlu0 %897 }
 0x2f1   :  { %v923_v39 = vmax.f32 %v875_v22, %v898_v38 }
 0x2f3   :  { %945 = vrot.lane.b32.xlu0 %v923_v39, %s1899_s24 }
 0x2f4   :  { %v900_v44 = vpop.permute.xlu1 %899 }
 0x2f5   :  { %v924_v45 = vmax.f32 %v876_v27, %v900_v44 }
 0x2f7   :  { %947 = vrot.lane.b32.xlu1 %v924_v45, %s1899_s24 }
 0x2f8   :  { %v902_v46 = vpop.permute.xlu0 %901 }
 0x2f9   :  { %v925_v47 = vmax.f32 %v877_v35, %v902_v46 }
 0x2fb   :  { %949 = vrot.lane.b32.xlu0 %v925_v47, %s1899_s24 }
 0x2fc   :  { %v904_v49 = vpop.permute.xlu1 %903 }
 0x2fd   :  { %v926_v50 = vmax.f32 %v878_v48, %v904_v49 }
 0x2ff   :  { %951 = vrot.lane.b32.xlu1 %v926_v50, %s1899_s24 }
 0x300   :  { %v906_v51 = vpop.permute.xlu0 %905 }
 0x301   :  { %v927_v52 = vmax.f32 %v879_v55, %v906_v51 }
 0x303   :  { %953 = vrot.lane.b32.xlu0 %v927_v52, %s1899_s24 }
 0x304   :  { %v908_v53 = vpop.permute.xlu1 %907 }
 0x305   :  { %v928_v54 = vmax.f32 %v880_v62, %v908_v53 }
 0x307   :  { %955 = vrot.lane.b32.xlu1 %v928_v54, %s1899_s24 }
 0x308   :  { %v910_v56 = vpop.permute.xlu0 %909 }
 0x309   :  { %v929_v57 = vmax.f32 %v881_v12, %v910_v56 }
 0x30b   :  { %957 = vrot.lane.b32.xlu0 %v929_v57, %s1899_s24 }
 0x30c   :  { %v912_v58 = vpop.permute.xlu1 %911 }
 0x30d   :  { %v930_v59 = vmax.f32 %v882_v15, %v912_v58 }
 0x30f   :  { %959 = vrot.lane.b32.xlu1 %v930_v59, %s1899_s24 }
 0x310   :  { %v914_v60 = vpop.permute.xlu0 %913 }
 0x311   :  { %v931_v61 = vmax.f32 %v883_v18, %v914_v60 }
 0x313   :  { %961 = vrot.lane.b32.xlu0 %v931_v61, %s1899_s24 }
 0x314   :  { %v916_v63 = vpop.permute.xlu1 %915 }
 0x315   :  { %v932_v1 = vmax.f32 %v884_v20, %v916_v63 }
 0x317   :  { %963 = vrot.lane.b32.xlu1 %v932_v1, %s1899_s24 }
 0x34d   :  { %v934_v42 = vpop.permute.xlu0 %933 }
 0x34e   :  { %v965_v41 = vmax.f32 %v917_v23, %v934_v42  ;;  %v1200_v23 = vld [vmem:[%s2555_s7 + $0x8] sm:$0xff] }
 0x34f   :  { %v1792_v24 = vpack.c.bf16 %v1200_v23, %v1199_v21 }
 0x350   :  { %1641 = vmatprep.mubr.msk.f32.mxu1 %vm149_vm0, %v965_v41 }
 0x351   :  { %v936_v43 = vpop.permute.xlu1 %935  ;;  %1793 = vmatprep.subr.bf16.mxu1 %v1792_v24 }
 0x352   :  { %v966_v2 = vmax.f32 %v918_v25, %v936_v43  ;;  %v1551_v25 = vld [vmem:[%s2554_s6] ss:$0 sm:$0xff] }
 0x354   :  { %1642 = vmatmul.mubr.msk.f32.vlgmr.msra.gmra.mrb[32].mxu1 %vm149_vm0, %v966_v2 }
 0x355   :  { %v938_v3 = vpop.permute.xlu0 %937  ;;  %1795 = vmatpush3.bf16.msra.mxu1 %v1792_v24 }
 0x356   :  { %v967_v4 = vmax.f32 %v919_v0, %v938_v3 }
 0x358   :  { %1644 = vmatprep.mubr.msk.f32.mxu1 %vm149_vm0, %v967_v4 }
 0x359   :  { %v940_v37 = vpop.permute.xlu1 %939 }
 0x35a   :  { %v968_v5 = vmax.f32 %v920_v29, %v940_v37 }
 0x35c   :  { %1645 = vmatmul.mubr.msk.f32.gmra.mrb[34].mxu1 %vm149_vm0, %v968_v5 }
 0x35d   :  { %v942_v14 = vpop.permute.xlu0 %941 }
 0x35e   :  { %v969_v6 = vmax.f32 %v921_v31, %v942_v14 }
 0x360   :  { %1647 = vmatprep.mubr.msk.f32.mxu1 %vm149_vm0, %v969_v6 }
 0x361   :  { %v944_v22 = vpop.permute.xlu1 %943 }
 0x362   :  { %v970_v7 = vmax.f32 %v922_v33, %v944_v22 }
 0x364   :  { %1648 = vmatmul.mubr.msk.f32.gmra.mrb[36].mxu1 %vm149_vm0, %v970_v7 }
 0x365   :  { %v946_v27 = vpop.permute.xlu0 %945 }
 0x366   :  { %v971_v8 = vmax.f32 %v923_v39, %v946_v27 }
 0x368   :  { %1650 = vmatprep.mubr.msk.f32.mxu1 %vm149_vm0, %v971_v8 }
 0x369   :  { %v948_v35 = vpop.permute.xlu1 %947 }
 0x36a   :  { %v972_v9 = vmax.f32 %v924_v45, %v948_v35 }
 0x36c   :  { %1651 = vmatmul.mubr.msk.f32.gmra.mrb[38].mxu1 %vm149_vm0, %v972_v9 }
 0x36d   :  { %v950_v48 = vpop.permute.xlu0 %949 }
 0x36e   :  { %v973_v10 = vmax.f32 %v925_v47, %v950_v48 }
 0x370   :  { %1653 = vmatprep.mubr.msk.f32.mxu1 %vm149_vm0, %v973_v10 }
 0x371   :  { %v952_v55 = vpop.permute.xlu1 %951 }
 0x372   :  { %v974_v36 = vmax.f32 %v926_v50, %v952_v55 }
 0x374   :  { %1654 = vmatmul.mubr.msk.f32.gmra.mrb[40].mxu1 %vm149_vm0, %v974_v36 }
 0x375   :  { %v954_v62 = vpop.permute.xlu0 %953 }
 0x376   :  { %v975_v40 = vmax.f32 %v927_v52, %v954_v62  ;;  %v2466_v62 = vld [vmem:[%s2556_s8] ss:$0 sm:$0xff] }
 0x378   :  { %1656 = vmatprep.mubr.msk.f32.mxu1 %vm149_vm0, %v975_v40 }
 0x379   :  { %v956_v12 = vpop.permute.xlu1 %955 }
 0x37a   :  { %v976_v34 = vmax.f32 %v928_v54, %v956_v12 }
 0x37c   :  { %1657 = vmatmul.mubr.msk.f32.gmra.mrb[42].mxu1 %vm149_vm0, %v976_v34 }
 0x37d   :  { %v958_v11 = vpop.permute.xlu0 %957 }
 0x37e   :  { %v977_v13 = vmax.f32 %v929_v57, %v958_v11 }
 0x380   :  { %1659 = vmatprep.mubr.msk.f32.mxu1 %vm149_vm0, %v977_v13 }
 0x381   :  { %v960_v15 = vpop.permute.xlu1 %959 }
 0x382   :  { %v978_v16 = vmax.f32 %v930_v59, %v960_v15 }
 0x384   :  { %1660 = vmatmul.mubr.msk.f32.gmra.mrb[44].mxu1 %vm149_vm0, %v978_v16 }
 0x385   :  { %v962_v17 = vpop.permute.xlu0 %961 }
 0x386   :  { %v979_v18 = vmax.f32 %v931_v61, %v962_v17 }
 0x388   :  { %1662 = vmatprep.mubr.msk.f32.mxu1 %vm149_vm0, %v979_v18 }
 0x389   :  { %v964_v19 = vpop.permute.xlu1 %963 }
 0x38a   :  { %v980_v20 = vmax.f32 %v932_v1, %v964_v19 }
 0x38c   :  { %1663 = vmatmul.mubr.msk.f32.gmra.mrb[46].mxu1 %vm149_vm0, %v980_v20 }
 0x427   :  { %v1643_v26 = vpop.f32.mrb[32].mxu1 }
 0x428   :  { %v1110_v0 = vadd.f32 %v1643_v26, %v1551_v25  ;;  %v1104_v28 = vpop.f32.mrb[33].mxu1 }
 0x429   :  { %v1105_v29 = vadd.f32 %v1551_v25, %v1104_v28 }
 0x42a   :  { %v1184_v31 = vmax.f32 %v1110_v0, 0.0 }
 0x42b   :  { %v1183_v30 = vmax.f32 %v1105_v29, 0.0 }
 0x42d   :  { %1669 = vmatprep.mubr.msk.f32.mxu1 %vm149_vm0, %v1183_v30 }
 0x42e   :  { %1670 = vmatmul.mubr.msk.f32.vlgmr.msra.gmra.mrb[48].mxu1 %vm149_vm0, %v1184_v31 }
 0x42f   :  { %v1646_v32 = vpop.f32.mrb[34].mxu1 }
 0x430   :  { %v1120_v33 = vadd.f32 %v1646_v32, %v1551_v25  ;;  %v1114_v38 = vpop.f32.mrb[35].mxu1 }
 0x431   :  { %v1115_v39 = vadd.f32 %v1551_v25, %v1114_v38 }
 0x432   :  { %v1186_v45 = vmax.f32 %v1120_v33, 0.0 }
 0x433   :  { %v1185_v44 = vmax.f32 %v1115_v39, 0.0 }
 0x435   :  { %1672 = vmatprep.mubr.msk.f32.mxu1 %vm149_vm0, %v1185_v44 }
 0x436   :  { %1673 = vmatmul.mubr.msk.f32.gmra.mrb[50].mxu1 %vm149_vm0, %v1186_v45 }
 0x437   :  { %v1649_v46 = vpop.f32.mrb[36].mxu1 }
 0x438   :  { %v1130_v47 = vadd.f32 %v1649_v46, %v1551_v25  ;;  %v1124_v49 = vpop.f32.mrb[37].mxu1 }
 0x439   :  { %v1125_v50 = vadd.f32 %v1551_v25, %v1124_v49 }
 0x43a   :  { %v1188_v52 = vmax.f32 %v1130_v47, 0.0 }
 0x43b   :  { %v1187_v51 = vmax.f32 %v1125_v50, 0.0 }
 0x43d   :  { %1675 = vmatprep.mubr.msk.f32.mxu1 %vm149_vm0, %v1187_v51 }
 0x43e   :  { %1676 = vmatmul.mubr.msk.f32.gmra.mrb[52].mxu1 %vm149_vm0, %v1188_v52 }
 0x43f   :  { %v1652_v53 = vpop.f32.mrb[38].mxu1 }
 0x440   :  { %v1140_v54 = vadd.f32 %v1652_v53, %v1551_v25  ;;  %v1134_v56 = vpop.f32.mrb[39].mxu1 }
 0x441   :  { %v1135_v57 = vadd.f32 %v1551_v25, %v1134_v56 }
 0x442   :  { %v1190_v59 = vmax.f32 %v1140_v54, 0.0 }
 0x443   :  { %v1189_v58 = vmax.f32 %v1135_v57, 0.0 }
 0x445   :  { %1678 = vmatprep.mubr.msk.f32.mxu1 %vm149_vm0, %v1189_v58 }
 0x446   :  { %1679 = vmatmul.mubr.msk.f32.gmra.mrb[54].mxu1 %vm149_vm0, %v1190_v59 }
 0x447   :  { %v1655_v60 = vpop.f32.mrb[40].mxu1 }
 0x448   :  { %v1150_v61 = vadd.f32 %v1655_v60, %v1551_v25  ;;  %v1144_v63 = vpop.f32.mrb[41].mxu1 }
 0x449   :  { %v1145_v1 = vadd.f32 %v1551_v25, %v1144_v63 }
 0x44a   :  { %v1192_v41 = vmax.f32 %v1150_v61, 0.0 }
 0x44b   :  { %v1191_v42 = vmax.f32 %v1145_v1, 0.0 }
 0x44d   :  { %1681 = vmatprep.mubr.msk.f32.mxu1 %vm149_vm0, %v1191_v42 }
 0x44e   :  { %1682 = vmatmul.mubr.msk.f32.gmra.mrb[56].mxu1 %vm149_vm0, %v1192_v41 }
 0x44f   :  { %v1658_v43 = vpop.f32.mrb[42].mxu1 }
 0x450   :  { %v1160_v2 = vadd.f32 %v1658_v43, %v1551_v25  ;;  %v1154_v3 = vpop.f32.mrb[43].mxu1 }
 0x451   :  { %v1155_v4 = vadd.f32 %v1551_v25, %v1154_v3 }
 0x452   :  { %v1194_v5 = vmax.f32 %v1160_v2, 0.0 }
 0x453   :  { %v1193_v37 = vmax.f32 %v1155_v4, 0.0 }
 0x455   :  { %1684 = vmatprep.mubr.msk.f32.mxu1 %vm149_vm0, %v1193_v37 }
 0x456   :  { %1685 = vmatmul.mubr.msk.f32.gmra.mrb[58].mxu1 %vm149_vm0, %v1194_v5 }
 0x457   :  { %v1661_v14 = vpop.f32.mrb[44].mxu1 }
 0x458   :  { %v1170_v6 = vadd.f32 %v1661_v14, %v1551_v25  ;;  %v1164_v22 = vpop.f32.mrb[45].mxu1 }
 0x459   :  { %v1165_v7 = vadd.f32 %v1551_v25, %v1164_v22 }
 0x45a   :  { %v1196_v8 = vmax.f32 %v1170_v6, 0.0 }
 0x45b   :  { %v1195_v27 = vmax.f32 %v1165_v7, 0.0 }
 0x45d   :  { %1687 = vmatprep.mubr.msk.f32.mxu1 %vm149_vm0, %v1195_v27 }
 0x45e   :  { %1688 = vmatmul.mubr.msk.f32.gmra.mrb[60].mxu1 %vm149_vm0, %v1196_v8 }
 0x45f   :  { %v1664_v35 = vpop.f32.mrb[46].mxu1 }
 0x460   :  { %v1180_v9 = vadd.f32 %v1664_v35, %v1551_v25  ;;  %v1174_v48 = vpop.f32.mrb[47].mxu1 }
 0x461   :  { %v1175_v10 = vadd.f32 %v1551_v25, %v1174_v48 }
 0x462   :  { %v1198_v36 = vmax.f32 %v1180_v9, 0.0 }
 0x463   :  { %v1197_v55 = vmax.f32 %v1175_v10, 0.0 }
 0x465   :  { %1690 = vmatprep.mubr.msk.f32.mxu1 %vm149_vm0, %v1197_v55 }
 0x466   :  { %1691 = vmatmul.mubr.msk.f32.gmra.mrb[62].mxu1 %vm149_vm0, %v1198_v36 }
 0x501   :  { %v1671_v40 = vpop.f32.mrb[48].mxu1 }
 0x502   :  { %v1328_v12 = vadd.f32 %v1671_v40, %v2466_v62  ;;  %v1322_v34 = vpop.f32.mrb[49].mxu1 }
 0x503   :  { %v1323_v11 = vadd.f32 %v2466_v62, %v1322_v34 }
 0x504   :  { %v1586_v13 = vmul.f32 -1.442695, %v1328_v12 }
 0x505   :  { %v1585_v15 = vmul.f32 -1.442695, %v1323_v11 }
 0x506   :  { %1804 = vpow2.f32 %v1586_v13 }
 0x507   :  { %1806 = vpow2.f32 %v1585_v15 }
 0x509   :  { %v1674_v16 = vpop.f32.mrb[50].mxu1 }
 0x50a   :  { %v1338_v17 = vadd.f32 %v1674_v16, %v2466_v62  ;;  %v1332_v18 = vpop.f32.mrb[51].mxu1 }
 0x50b   :  { %v1333_v19 = vadd.f32 %v2466_v62, %v1332_v18 }
 0x50c   :  { %v1588_v20 = vmul.f32 -1.442695, %v1338_v17 }
 0x50d   :  { %v1587_v21 = vmul.f32 -1.442695, %v1333_v19 }
 0x50e   :  { %1808 = vpow2.f32 %v1588_v20 }
 0x50f   :  { %1810 = vpow2.f32 %v1587_v21 }
 0x510   :  { %v1805_v23 = vpop.eup %1804 }
 0x511   :  { %v1807_v24 = vpop.eup %1806  ;;  %v1450_v25 = vadd.f32 1.0, %v1805_v23  ;;  %v1677_v26 = vpop.f32.mrb[52].mxu1 }
 0x512   :  { %v1449_v0 = vadd.f32 1.0, %v1807_v24  ;;  %v1348_v28 = vadd.f32 %v1677_v26, %v2466_v62  ;;  %v1342_v29 = vpop.f32.mrb[53].mxu1 }
 0x513   :  { %1812 = vrcp.f32 %v1450_v25  ;;  %v1343_v30 = vadd.f32 %v2466_v62, %v1342_v29 }
 0x514   :  { %1814 = vrcp.f32 %v1449_v0  ;;  %v1590_v31 = vmul.f32 -1.442695, %v1348_v28 }
 0x515   :  { %v1589_v32 = vmul.f32 -1.442695, %v1343_v30 }
 0x516   :  { %1816 = vpow2.f32 %v1590_v31 }
 0x517   :  { %1818 = vpow2.f32 %v1589_v32 }
 0x518   :  { %v1809_v33 = vpop.eup %1808 }
 0x519   :  { %v1811_v38 = vpop.eup %1810  ;;  %v1452_v39 = vadd.f32 1.0, %v1809_v33  ;;  %v1680_v44 = vpop.f32.mrb[54].mxu1 }
 0x51a   :  { %v1451_v45 = vadd.f32 1.0, %v1811_v38  ;;  %v1358_v46 = vadd.f32 %v1680_v44, %v2466_v62  ;;  %v1352_v47 = vpop.f32.mrb[55].mxu1 }
 0x51b   :  { %1820 = vrcp.f32 %v1452_v39  ;;  %v1353_v49 = vadd.f32 %v2466_v62, %v1352_v47 }
 0x51c   :  { %1822 = vrcp.f32 %v1451_v45  ;;  %v1592_v50 = vmul.f32 -1.442695, %v1358_v46 }
 0x51d   :  { %v1813_v51 = vpop.eup %1812  ;;  %v1591_v52 = vmul.f32 -1.442695, %v1353_v49 }
 0x51e   :  { %v1815_v53 = vpop.eup %1814  ;;  %1499 = vst.msk [vmem:[%s2557_s9 + $0x8] sm:$0xff] %vm1497_vm1, %v1813_v51  ;;  %1824 = vpow2.f32 %v1592_v50 }
 0x51f   :  { %1498 = vst.msk [vmem:[%s2557_s9] sm:$0xff] %vm1497_vm1, %v1815_v53  ;;  %1826 = vpow2.f32 %v1591_v52 }
 0x520   :  { %v1817_v54 = vpop.eup %1816 }
 0x521   :  { %v1819_v56 = vpop.eup %1818  ;;  %v1454_v57 = vadd.f32 1.0, %v1817_v54  ;;  %v1683_v58 = vpop.f32.mrb[56].mxu1 }
 0x522   :  { %v1453_v59 = vadd.f32 1.0, %v1819_v56  ;;  %v1368_v60 = vadd.f32 %v1683_v58, %v2466_v62  ;;  %v1362_v61 = vpop.f32.mrb[57].mxu1 }
 0x523   :  { %1828 = vrcp.f32 %v1454_v57  ;;  %v1363_v63 = vadd.f32 %v2466_v62, %v1362_v61 }
 0x524   :  { %1830 = vrcp.f32 %v1453_v59  ;;  %v1594_v1 = vmul.f32 -1.442695, %v1368_v60 }
 0x525   :  { %v1821_v42 = vpop.eup %1820  ;;  %v1593_v41 = vmul.f32 -1.442695, %v1363_v63 }
 0x526   :  { %v1823_v43 = vpop.eup %1822  ;;  %1501 = vst.msk [vmem:[%s2557_s9 + $0x18] sm:$0xff] %vm1497_vm1, %v1821_v42  ;;  %1832 = vpow2.f32 %v1594_v1 }
 0x527   :  { %1500 = vst.msk [vmem:[%s2557_s9 + $0x10] sm:$0xff] %vm1497_vm1, %v1823_v43  ;;  %1834 = vpow2.f32 %v1593_v41 }
 0x528   :  { %v1825_v2 = vpop.eup %1824 }
 0x529   :  { %v1827_v3 = vpop.eup %1826  ;;  %v1456_v4 = vadd.f32 1.0, %v1825_v2  ;;  %v1686_v37 = vpop.f32.mrb[58].mxu1 }
 0x52a   :  { %v1455_v5 = vadd.f32 1.0, %v1827_v3  ;;  %v1378_v14 = vadd.f32 %v1686_v37, %v2466_v62  ;;  %v1372_v6 = vpop.f32.mrb[59].mxu1 }
 0x52b   :  { %1836 = vrcp.f32 %v1456_v4  ;;  %v1373_v22 = vadd.f32 %v2466_v62, %v1372_v6 }
 0x52c   :  { %1838 = vrcp.f32 %v1455_v5  ;;  %v1596_v7 = vmul.f32 -1.442695, %v1378_v14 }
 0x52d   :  { %v1829_v27 = vpop.eup %1828  ;;  %v1595_v8 = vmul.f32 -1.442695, %v1373_v22 }
 0x52e   :  { %v1831_v35 = vpop.eup %1830  ;;  %1503 = vst.msk [vmem:[%s2557_s9 + $0x28] sm:$0xff] %vm1497_vm1, %v1829_v27  ;;  %1840 = vpow2.f32 %v1596_v7 }
 0x52f   :  { %1502 = vst.msk [vmem:[%s2557_s9 + $0x20] sm:$0xff] %vm1497_vm1, %v1831_v35  ;;  %1842 = vpow2.f32 %v1595_v8 }
 0x530   :  { %v1833_v9 = vpop.eup %1832 }
 0x531   :  { %v1835_v48 = vpop.eup %1834  ;;  %v1458_v10 = vadd.f32 1.0, %v1833_v9  ;;  %v1689_v55 = vpop.f32.mrb[60].mxu1 }
 0x532   :  { %v1457_v36 = vadd.f32 1.0, %v1835_v48  ;;  %v1388_v40 = vadd.f32 %v1689_v55, %v2466_v62  ;;  %v1382_v12 = vpop.f32.mrb[61].mxu1 }
 0x533   :  { %1844 = vrcp.f32 %v1458_v10  ;;  %v1383_v34 = vadd.f32 %v2466_v62, %v1382_v12 }
 0x534   :  { %1846 = vrcp.f32 %v1457_v36  ;;  %v1598_v11 = vmul.f32 -1.442695, %v1388_v40 }
 0x535   :  { %v1837_v13 = vpop.eup %1836  ;;  %v1597_v15 = vmul.f32 -1.442695, %v1383_v34 }
 0x536   :  { %v1839_v16 = vpop.eup %1838  ;;  %1505 = vst.msk [vmem:[%s2557_s9 + $0x38] sm:$0xff] %vm1497_vm1, %v1837_v13  ;;  %1848 = vpow2.f32 %v1598_v11 }
 0x537   :  { %1504 = vst.msk [vmem:[%s2557_s9 + $0x30] sm:$0xff] %vm1497_vm1, %v1839_v16  ;;  %1850 = vpow2.f32 %v1597_v15 }
 0x538   :  { %v1841_v17 = vpop.eup %1840 }
 0x539   :  { %v1843_v18 = vpop.eup %1842  ;;  %v1460_v19 = vadd.f32 1.0, %v1841_v17  ;;  %v1692_v20 = vpop.f32.mrb[62].mxu1 }
 0x53a   :  { %v1459_v21 = vadd.f32 1.0, %v1843_v18  ;;  %v1398_v23 = vadd.f32 %v1692_v20, %v2466_v62  ;;  %v1392_v24 = vpop.f32.mrb[63].mxu1 }
 0x53b   :  { %1852 = vrcp.f32 %v1460_v19  ;;  %v1393_v25 = vadd.f32 %v2466_v62, %v1392_v24 }
 0x53c   :  { %1854 = vrcp.f32 %v1459_v21  ;;  %v1600_v26 = vmul.f32 -1.442695, %v1398_v23 }
 0x53d   :  { %v1845_v0 = vpop.eup %1844  ;;  %v1599_v28 = vmul.f32 -1.442695, %v1393_v25 }
 0x53e   :  { %v1847_v29 = vpop.eup %1846  ;;  %1507 = vst.msk [vmem:[%s2557_s9 + $0x48] sm:$0xff] %vm1497_vm1, %v1845_v0  ;;  %1856 = vpow2.f32 %v1600_v26 }
 0x53f   :  { %1506 = vst.msk [vmem:[%s2557_s9 + $0x40] sm:$0xff] %vm1497_vm1, %v1847_v29  ;;  %1858 = vpow2.f32 %v1599_v28 }
 0x540   :  { %v1849_v30 = vpop.eup %1848 }
 0x541   :  { %v1851_v31 = vpop.eup %1850  ;;  %v1462_v62 = vadd.f32 1.0, %v1849_v30 }
 0x542   :  { %v1461_v32 = vadd.f32 1.0, %v1851_v31 }
 0x543   :  { %1860 = vrcp.f32 %v1462_v62 }
 0x544   :  { %1862 = vrcp.f32 %v1461_v32 }
 0x545   :  { %v1853_v33 = vpop.eup %1852 }
 0x546   :  { %v1855_v38 = vpop.eup %1854  ;;  %1509 = vst.msk [vmem:[%s2557_s9 + $0x58] sm:$0xff] %vm1497_vm1, %v1853_v33 }
 0x547   :  { %1508 = vst.msk [vmem:[%s2557_s9 + $0x50] sm:$0xff] %vm1497_vm1, %v1855_v38 }
 0x548   :  { %v1857_v39 = vpop.eup %1856 }
 0x549   :  { %v1859_v44 = vpop.eup %1858  ;;  %v1464_v45 = vadd.f32 1.0, %v1857_v39 }
 0x54a   :  { %v1463_v46 = vadd.f32 1.0, %v1859_v44 }
 0x54b   :  { %1864 = vrcp.f32 %v1464_v45 }
 0x54c   :  { %1866 = vrcp.f32 %v1463_v46 }
 0x54d   :  { %v1861_v47 = vpop.eup %1860 }
 0x54e   :  { %v1863_v49 = vpop.eup %1862  ;;  %1511 = vst.msk [vmem:[%s2557_s9 + $0x68] sm:$0xff] %vm1497_vm1, %v1861_v47 }
 0x54f   :  { %1510 = vst.msk [vmem:[%s2557_s9 + $0x60] sm:$0xff] %vm1497_vm1, %v1863_v49 }
 0x555   :  { %v1865_v50 = vpop.eup %1864 }
 0x556   :  { %v1867_v51 = vpop.eup %1866  ;;  %1513 = vst.msk [vmem:[%s2557_s9 + $0x78] sm:$0xff] %vm1497_vm1, %v1865_v50 }
 0x557   :  { %1512 = vst.msk [vmem:[%s2557_s9 + $0x70] sm:$0xff] %vm1497_vm1, %v1867_v51 }
 0x558   :  { %1518 = vsyncpa [#allocation3], 1 }

</bundles_post_ra>
